<compile_context>
chip_gen: v7x
topology: tpu7x:2x2x1
jax: 0.10.0
libtpu: 0.0.40
codegen_flags: <defaults>
</compile_context>

<pallas_src>
import math

import jax
import jax.numpy as jnp
from jax.experimental import pallas as pl
from jax.experimental.pallas import tpu as pltpu

# ---- small, self-consistent ModelArgs ------------------------------------------
DIM = 64
N_LAYERS = 2
N_HEADS = 4
N_KV_HEADS = 2
HEAD_DIM = DIM // N_HEADS           # 16
N_REP = N_HEADS // N_KV_HEADS       # 2
VOCAB = 128
MULTIPLE_OF = 32
NORM_EPS = 1e-6
B = 2
ROPE_THETA = 10000.0
CACHE_IDX = 1                       # module's internal cache_idx at this forward

LANE = 128                          # lane-aligned block width for q/k/v
M_PAD = 8                           # pad batch rows to one full sublane group


def _ffn_hidden(dim, multiple_of):
    hidden = 4 * dim
    hidden = int(2 * hidden / 3)
    return multiple_of * ((hidden + multiple_of - 1) // multiple_of)


HIDDEN = _ffn_hidden(DIM, MULTIPLE_OF)   # 192
HPAD = 256                               # HIDDEN padded to a multiple of 128


# ---- fused Pallas kernel ---------------------------------------------------------
def fused_transformer_kernel(tok_ref,        # VMEM (M_PAD, 1) int32
                             emb_ref,        # VMEM (VOCAB, DIM) bf16
                             attn_norm_ref,  # (L, 1, DIM) f32
                             ffn_norm_ref,   # (L, 1, DIM) f32
                             wqkv_ref,       # (L, DIM, 3*LANE) bf16, RoPE folded, lane-padded
                             wo_ref,         # (L, LANE, DIM) bf16 (rows 64: zero pad)
                             w13_ref,        # (L, DIM, 2*HPAD) bf16 [w1|pad | w3|pad]
                             w2_ref,         # (L, HPAD, DIM) bf16 (rows 192: zero pad)
                             msum_ref,       # (LANE, LANE) bf16 per-head sum+broadcast (scaled)
                             fnorm_ref,      # (1, DIM) f32
                             wout_ref,       # (DIM, VOCAB) bf16
                             out_ref):       # (M_PAD, VOCAB) f32
    # ---- embedding gather as one-hot matmul (lane/sublane aligned, OOB-safe) ----
    tok = tok_ref[...]                                               # (M_PAD, 1) i32
    iota = jax.lax.broadcasted_iota(jnp.int32, (M_PAD, VOCAB), 1)
    onehot = (iota == tok).astype(jnp.bfloat16)                      # (M_PAD, VOCAB)
    h = jnp.dot(onehot, emb_ref[...],
                preferred_element_type=jnp.float32)                  # (M_PAD, DIM) f32

    def rmsnorm(x, w):
        ms = jnp.mean(x * x, axis=-1, keepdims=True)
        return w * (x * jax.lax.rsqrt(ms + NORM_EPS))

    for l in range(N_LAYERS):                                        # unrolled (weights are tiny)
        # ---------------- attention ----------------
        xn = rmsnorm(h, attn_norm_ref[l])
        # fused QKV projection (RoPE@pos=1 and repeat_kv folded into the columns)
        qkv = jnp.dot(xn.astype(jnp.bfloat16), wqkv_ref[l],
                      preferred_element_type=jnp.float32)            # (M, 3*LANE)
        q = qkv[:, :LANE]                                            # 128-aligned slices:
        k = qkv[:, LANE:2 * LANE]                                    #   no cross-lane moves
        v = qkv[:, 2 * LANE:]
        # KV cache = [zeros @ pos0, current @ pos1] -> 2-entry softmax == sigmoid(score);
        # msum broadcasts each head's scaled q.k sum across that head's lanes.
        s = jnp.dot((q * k).astype(jnp.bfloat16), msum_ref[...],
                    preferred_element_type=jnp.float32)              # (M, LANE)
        attn = jnp.dot((jax.nn.sigmoid(s) * v).astype(jnp.bfloat16), wo_ref[l],
                       preferred_element_type=jnp.float32)           # (M, DIM)
        h = h + attn

        # ---------------- SwiGLU FFN ----------------
        hn = rmsnorm(h, ffn_norm_ref[l])
        g = jnp.dot(hn.astype(jnp.bfloat16), w13_ref[l],
                    preferred_element_type=jnp.float32)              # (M, 2*HPAD)
        a = g[:, :HPAD]                                              # 128-aligned split
        b3 = g[:, HPAD:]
        ffn = jnp.dot((jax.nn.silu(a) * b3).astype(jnp.bfloat16), w2_ref[l],
                      preferred_element_type=jnp.float32)            # (M, DIM)
        h = h + ffn

    # ---------------- final norm + output projection ----------------
    xn = rmsnorm(h, fnorm_ref[...])
    out_ref[...] = jnp.dot(xn.astype(jnp.bfloat16), wout_ref[...],
                           preferred_element_type=jnp.float32)       # (M_PAD, VOCAB)


# ---- wrapper --------------------------------------------------------------------
@jax.jit
def transformer_forward(tokens, params):
    assert tokens.shape[1] == 1, "only one token at a time can be processed"
    bsz = tokens.shape[0]
    tok = tokens[:, :1].astype(jnp.int32)                            # (B, 1)
    tok_pad = jnp.zeros((M_PAD, 1), jnp.int32).at[:bsz].set(tok)     # pad to 8 sublanes
    args = (params["emb"], params["attn_norm"], params["ffn_norm"],
            params["wqkv"], params["wo"], params["w13"], params["w2"],
            params["msum"], params["final_norm"], params["wout"])
    vm = pl.BlockSpec(memory_space=pltpu.MemorySpace.VMEM)
    logits = pl.pallas_call(
        fused_transformer_kernel,
        out_shape=jax.ShapeDtypeStruct((M_PAD, VOCAB), jnp.float32),
        in_specs=[vm] * (1 + len(args)),
        out_specs=vm,
    )(tok_pad, *args)
    return logits[:bsz].reshape(bsz, 1, VOCAB)


# ---- parameter preparation (one-time glue) ---------------------------------------
def rope_rotation_matrix(head_dim, pos, theta=ROPE_THETA):
    half = head_dim // 2
    inv_freq = 1.0 / (theta ** (jnp.arange(0, head_dim, 2, dtype=jnp.float32) / head_dim))
    ang = pos * inv_freq
    c, s = jnp.cos(ang), jnp.sin(ang)
    R = jnp.zeros((head_dim, head_dim), jnp.float32)
    idx = 2 * jnp.arange(half)
    R = R.at[idx, idx].set(c)
    R = R.at[idx, idx + 1].set(s)
    R = R.at[idx + 1, idx].set(-s)
    R = R.at[idx + 1, idx + 1].set(c)
    return R


def _repeat_kv_cols(w):
    # (DIM, N_KV_HEADS*HEAD_DIM) -> (DIM, N_HEADS*HEAD_DIM), columns [kv0,kv0,kv1,kv1]
    blocks = []
    for g in range(N_KV_HEADS):
        blk = w[:, g * HEAD_DIM:(g + 1) * HEAD_DIM]
        blocks.extend([blk] * N_REP)
    return jnp.concatenate(blocks, axis=1)


def _pad_cols(w, n):
    return jnp.concatenate([w, jnp.zeros((w.shape[0], n - w.shape[1]), w.dtype)], axis=1)


def _pad_rows(w, n):
    return jnp.concatenate([w, jnp.zeros((n - w.shape[0], w.shape[1]), w.dtype)], axis=0)


def prepare_params(emb, layers, final_norm_w, w_out):
    # The softmax->sigmoid collapse and the baked RoPE position are only valid
    # for the module's first decode step (zero KV cache, cache_idx == 1).
    assert CACHE_IDX == 1, "kernel models the first decode step only"

    R = rope_rotation_matrix(HEAD_DIM, pos=float(CACHE_IDX))                 # (16, 16) f32
    rope_heads = jnp.kron(jnp.eye(N_HEADS, dtype=jnp.float32), R)            # (64, 64) f32

    # per-head sum + broadcast (scaled) for the lane-padded q*k layout
    blk = (jnp.kron(jnp.eye(N_HEADS, dtype=jnp.float32),
                    jnp.ones((HEAD_DIM, HEAD_DIM), jnp.float32))
           / math.sqrt(HEAD_DIM))                                            # (64, 64)
    msum = jnp.zeros((LANE, LANE), jnp.float32).at[:DIM, :DIM].set(blk)
    msum = msum.astype(jnp.bfloat16)                                         # 0.25 / 0.0 exact

    wqkv, wo, w13, w2, attn_norm, ffn_norm = [], [], [], [], [], []
    for p in layers:
        # exact-order RoPE fold in f32, then a single bf16 cast
        wq_rot = p["wq"] @ rope_heads
        wk_rot = _repeat_kv_cols(p["wk"]) @ rope_heads
        wv_rep = _repeat_kv_cols(p["wv"])
        wqkv.append(jnp.concatenate(
            [_pad_cols(wq_rot, LANE), _pad_cols(wk_rot, LANE), _pad_cols(wv_rep, LANE)],
            axis=1).astype(jnp.bfloat16))                                    # (64, 384)
        wo.append(_pad_rows(p["wo"], LANE).astype(jnp.bfloat16))             # (128, 64)
        w13.append(jnp.concatenate(
            [_pad_cols(p["w1"], HPAD), _pad_cols(p["w3"], HPAD)],
            axis=1).astype(jnp.bfloat16))                                    # (64, 512)
        w2.append(_pad_rows(p["w2"], HPAD).astype(jnp.bfloat16))             # (256, 64)
        attn_norm.append(p["attn_norm"])
        ffn_norm.append(p["ffn_norm"])

    return dict(
        emb=emb.astype(jnp.bfloat16),         # (VOCAB, DIM) bf16 (values bf16-exact)
        attn_norm=jnp.stack(attn_norm),       # (L, 1, DIM) f32
        ffn_norm=jnp.stack(ffn_norm),         # (L, 1, DIM) f32
        wqkv=jnp.stack(wqkv),                 # (L, DIM, 3*LANE) bf16
        wo=jnp.stack(wo),                     # (L, LANE, DIM) bf16
        w13=jnp.stack(w13),                   # (L, DIM, 2*HPAD) bf16
        w2=jnp.stack(w2),                     # (L, HPAD, DIM) bf16
        msum=msum,                            # (LANE, LANE) bf16
        final_norm=final_norm_w,              # (1, DIM) f32
        wout=w_out.astype(jnp.bfloat16),      # (DIM, VOCAB) bf16
    )


# ---- pure-JAX reference mirroring the torch semantics (sanity check) --------------
def reference_forward(tokens, emb, layers, final_norm_w, w_out):
    half = HEAD_DIM // 2
    inv_freq = 1.0 / (ROPE_THETA ** (jnp.arange(0, HEAD_DIM, 2, dtype=jnp.float32) / HEAD_DIM))
    pos = jnp.arange(4, dtype=jnp.float32)
    ang = jnp.outer(pos, inv_freq)
    cos, sin = jnp.cos(ang), jnp.sin(ang)

    def rmsnorm(x, w):
        return w * (x * jax.lax.rsqrt(jnp.mean(x * x, axis=-1, keepdims=True) + NORM_EPS))

    def rope(x, c, s):
        xr = x.reshape(x.shape[:-1] + (half, 2))
        x0, x1 = xr[..., 0], xr[..., 1]
        c_, s_ = c[None, :, None, :], s[None, :, None, :]
        return jnp.stack([x0 * c_ - x1 * s_, x0 * s_ + x1 * c_], axis=-1).reshape(x.shape)

    h = emb[tokens[:, 0]][:, None, :]  # (B, 1, D)
    for p in layers:
        xn = rmsnorm(h, p["attn_norm"][0])
        Bsz, S, D = xn.shape
        xq = (xn @ p["wq"]).reshape(Bsz, S, N_HEADS, HEAD_DIM)
        xk = (xn @ p["wk"]).reshape(Bsz, S, N_KV_HEADS, HEAD_DIM)
        xv = (xn @ p["wv"]).reshape(Bsz, S, N_KV_HEADS, HEAD_DIM)
        xq = rope(xq, cos[CACHE_IDX:CACHE_IDX + S], sin[CACHE_IDX:CACHE_IDX + S])
        zeros_kv = jnp.zeros((Bsz, CACHE_IDX, N_KV_HEADS, HEAD_DIM), jnp.float32)
        keys = rope(jnp.concatenate([zeros_kv, xk], axis=1), cos[:CACHE_IDX + S], sin[:CACHE_IDX + S])
        values = jnp.concatenate([zeros_kv, xv], axis=1)
        keys = jnp.repeat(keys, N_REP, axis=2)
        values = jnp.repeat(values, N_REP, axis=2)
        q = xq.transpose(0, 2, 1, 3)
        k = keys.transpose(0, 2, 1, 3)
        v = values.transpose(0, 2, 1, 3)
        scores = jax.nn.softmax((q @ k.transpose(0, 1, 3, 2)) / math.sqrt(HEAD_DIM), axis=-1)
        out = (scores @ v).transpose(0, 2, 1, 3).reshape(Bsz, S, D)
        h = h + out @ p["wo"]
        hn = rmsnorm(h, p["ffn_norm"][0])
        a = hn @ p["w1"]
        h = h + ((a * jax.nn.sigmoid(a)) * (hn @ p["w3"])) @ p["w2"]
    h = rmsnorm(h, final_norm_w[0])
    return (h @ w_out).astype(jnp.float32)


if __name__ == "__main__":
    key = jax.random.PRNGKey(0)
    k_emb, k_out, k_tok, *layer_keys = jax.random.split(key, 3 + N_LAYERS)

    def q(w):  # quantize parameters to bf16-representable values (shared by kernel & reference)
        return w.astype(jnp.bfloat16).astype(jnp.float32)

    emb = q(jax.random.normal(k_emb, (VOCAB, DIM), jnp.float32) * 0.02)
    w_out = q(jax.random.normal(k_out, (DIM, VOCAB), jnp.float32) * 0.02)
    final_norm_w = jnp.ones((1, DIM), jnp.float32)

    layers = []
    for lk in layer_keys:
        ks = jax.random.split(lk, 7)
        layers.append(dict(
            attn_norm=jnp.ones((1, DIM), jnp.float32),
            ffn_norm=jnp.ones((1, DIM), jnp.float32),
            wq=q(jax.random.normal(ks[0], (DIM, N_HEADS * HEAD_DIM), jnp.float32) * 0.05),
            wk=q(jax.random.normal(ks[1], (DIM, N_KV_HEADS * HEAD_DIM), jnp.float32) * 0.05),
            wv=q(jax.random.normal(ks[2], (DIM, N_KV_HEADS * HEAD_DIM), jnp.float32) * 0.05),
            wo=q(jax.random.normal(ks[3], (DIM, DIM), jnp.float32) * 0.05),
            w1=q(jax.random.normal(ks[4], (DIM, HIDDEN), jnp.float32) * 0.05),
            w2=q(jax.random.normal(ks[5], (HIDDEN, DIM), jnp.float32) * 0.05),
            w3=q(jax.random.normal(ks[6], (DIM, HIDDEN), jnp.float32) * 0.05),
        ))

    tokens = jax.random.randint(k_tok, (B, 1), 0, VOCAB)  # seq_len must be 1
    params = prepare_params(emb, layers, final_norm_w, w_out)

    logits = transformer_forward(tokens, params)
    logits = jax.block_until_ready(logits)

    assert logits.shape == (B, 1, VOCAB)
    assert bool(jnp.all(jnp.isfinite(logits)))

    ref = reference_forward(tokens, emb, layers, final_norm_w, w_out)
    max_err = float(jnp.max(jnp.abs(logits.reshape(B, 1, VOCAB) - ref.reshape(B, 1, VOCAB))))
    assert max_err < 5e-2, f"mismatch vs reference: {max_err}"

    print("KERNEL_OK")
</pallas_src>

<mosaic_0001>
module attributes {stable_mosaic.version = 11 : i64} {
  func.func @fused_transformer_kernel(%arg0: memref<8x1xi32, #tpu.memory_space<vmem>>, %arg1: memref<128x64xbf16, #tpu.memory_space<vmem>>, %arg2: memref<2x1x64xf32, #tpu.memory_space<vmem>>, %arg3: memref<2x1x64xf32, #tpu.memory_space<vmem>>, %arg4: memref<2x64x384xbf16, #tpu.memory_space<vmem>>, %arg5: memref<2x128x64xbf16, #tpu.memory_space<vmem>>, %arg6: memref<2x64x512xbf16, #tpu.memory_space<vmem>>, %arg7: memref<2x256x64xbf16, #tpu.memory_space<vmem>>, %arg8: memref<128x128xbf16, #tpu.memory_space<vmem>>, %arg9: memref<1x64xf32, #tpu.memory_space<vmem>>, %arg10: memref<64x128xbf16, #tpu.memory_space<vmem>>, %arg11: memref<8x128xf32, #tpu.memory_space<vmem>>) attributes {dimension_semantics = [], scalar_prefetch = 0 : i64, scratch_operands = 0 : i64, tpu.core_type = #tpu.core_type<tc>} {
    %c0 = arith.constant 0 : index
    %c0_0 = arith.constant 0 : index
    %0 = vector.load %arg0[%c0, %c0_0] : memref<8x1xi32, #tpu.memory_space<vmem>>, vector<8x1xi32>
    %1 = tpu.iota {dimensions = array<i32: 1>} : vector<8x128xi32>
    %2 = vector.broadcast %0 : vector<8x1xi32> to vector<8x128xi32>
    %3 = arith.cmpi eq, %1, %2 : vector<8x128xi32>
    %4 = arith.extui %3 : vector<8x128xi1> to vector<8x128xi32>
    %5 = arith.sitofp %4 : vector<8x128xi32> to vector<8x128xf32>
    %6 = arith.truncf %5 : vector<8x128xf32> to vector<8x128xbf16>
    %c0_1 = arith.constant 0 : index
    %c0_2 = arith.constant 0 : index
    %7 = vector.load %arg1[%c0_1, %c0_2] : memref<128x64xbf16, #tpu.memory_space<vmem>>, vector<128x64xbf16>
    %cst = arith.constant dense<0.000000e+00> : vector<8x64xf32>
    %8 = tpu.matmul %6, %7, %cst {dimension_numbers = #tpu.dot_dimension_numbers<[1], [0], [0], [1], [0, 0, 1, 1], [], []>} : vector<8x128xbf16>, vector<128x64xbf16>, vector<8x64xf32> -> vector<8x64xf32>
    %c0_3 = arith.constant 0 : index
    %c0_4 = arith.constant 0 : index
    %c0_5 = arith.constant 0 : index
    %9 = vector.load %arg2[%c0_3, %c0_4, %c0_5] : memref<2x1x64xf32, #tpu.memory_space<vmem>>, vector<1x1x64xf32>
    %10 = vector.shape_cast %9 : vector<1x1x64xf32> to vector<1x64xf32>
    %11 = arith.mulf %8, %8 : vector<8x64xf32>
    %cst_6 = arith.constant dense<0.000000e+00> : vector<8xf32>
    %12 = vector.multi_reduction <add>, %11, %cst_6 [1] : vector<8x64xf32> to vector<8xf32>
    %13 = vector.shape_cast %12 : vector<8xf32> to vector<8x1xf32>
    %cst_7 = arith.constant 6.400000e+01 : f32
    %14 = vector.broadcast %cst_7 : f32 to vector<8x1xf32>
    %15 = arith.divf %13, %14 : vector<8x1xf32>
    %cst_8 = arith.constant 9.99999997E-7 : f32
    %16 = vector.broadcast %cst_8 : f32 to vector<8x1xf32>
    %17 = arith.addf %15, %16 : vector<8x1xf32>
    %18 = math.rsqrt %17 : vector<8x1xf32>
    %19 = vector.broadcast %18 : vector<8x1xf32> to vector<8x64xf32>
    %20 = arith.mulf %8, %19 : vector<8x64xf32>
    %21 = vector.broadcast %10 : vector<1x64xf32> to vector<8x64xf32>
    %22 = arith.mulf %21, %20 : vector<8x64xf32>
    %23 = arith.truncf %22 : vector<8x64xf32> to vector<8x64xbf16>
    %c0_9 = arith.constant 0 : index
    %c0_10 = arith.constant 0 : index
    %c0_11 = arith.constant 0 : index
    %24 = vector.load %arg4[%c0_9, %c0_10, %c0_11] : memref<2x64x384xbf16, #tpu.memory_space<vmem>>, vector<1x64x384xbf16>
    %25 = vector.shape_cast %24 : vector<1x64x384xbf16> to vector<64x384xbf16>
    %cst_12 = arith.constant dense<0.000000e+00> : vector<8x384xf32>
    %26 = tpu.matmul %23, %25, %cst_12 {dimension_numbers = #tpu.dot_dimension_numbers<[1], [0], [0], [1], [0, 0, 1, 1], [], []>} : vector<8x64xbf16>, vector<64x384xbf16>, vector<8x384xf32> -> vector<8x384xf32>
    %27 = vector.extract_strided_slice %26 {offsets = [0, 0], sizes = [8, 128], strides = [1, 1]} : vector<8x384xf32> to vector<8x128xf32>
    %28 = vector.extract_strided_slice %26 {offsets = [0, 128], sizes = [8, 128], strides = [1, 1]} : vector<8x384xf32> to vector<8x128xf32>
    %29 = vector.extract_strided_slice %26 {offsets = [0, 256], sizes = [8, 128], strides = [1, 1]} : vector<8x384xf32> to vector<8x128xf32>
    %30 = arith.mulf %27, %28 : vector<8x128xf32>
    %31 = arith.truncf %30 : vector<8x128xf32> to vector<8x128xbf16>
    %c0_13 = arith.constant 0 : index
    %c0_14 = arith.constant 0 : index
    %32 = vector.load %arg8[%c0_13, %c0_14] : memref<128x128xbf16, #tpu.memory_space<vmem>>, vector<128x128xbf16>
    %cst_15 = arith.constant dense<0.000000e+00> : vector<8x128xf32>
    %33 = tpu.matmul %31, %32, %cst_15 {dimension_numbers = #tpu.dot_dimension_numbers<[1], [0], [0], [1], [0, 0, 1, 1], [], []>} : vector<8x128xbf16>, vector<128x128xbf16>, vector<8x128xf32> -> vector<8x128xf32>
    %34 = arith.negf %33 : vector<8x128xf32>
    %35 = math.exp %34 : vector<8x128xf32>
    %cst_16 = arith.constant 1.000000e+00 : f32
    %36 = vector.broadcast %cst_16 : f32 to vector<8x128xf32>
    %37 = arith.addf %36, %35 : vector<8x128xf32>
    %38 = arith.divf %36, %37 : vector<8x128xf32>
    %39 = arith.mulf %38, %29 : vector<8x128xf32>
    %40 = arith.truncf %39 : vector<8x128xf32> to vector<8x128xbf16>
    %c0_17 = arith.constant 0 : index
    %c0_18 = arith.constant 0 : index
    %c0_19 = arith.constant 0 : index
    %41 = vector.load %arg5[%c0_17, %c0_18, %c0_19] : memref<2x128x64xbf16, #tpu.memory_space<vmem>>, vector<1x128x64xbf16>
    %42 = vector.shape_cast %41 : vector<1x128x64xbf16> to vector<128x64xbf16>
    %cst_20 = arith.constant dense<0.000000e+00> : vector<8x64xf32>
    %43 = tpu.matmul %40, %42, %cst_20 {dimension_numbers = #tpu.dot_dimension_numbers<[1], [0], [0], [1], [0, 0, 1, 1], [], []>} : vector<8x128xbf16>, vector<128x64xbf16>, vector<8x64xf32> -> vector<8x64xf32>
    %44 = arith.addf %8, %43 : vector<8x64xf32>
    %c0_21 = arith.constant 0 : index
    %c0_22 = arith.constant 0 : index
    %c0_23 = arith.constant 0 : index
    %45 = vector.load %arg3[%c0_21, %c0_22, %c0_23] : memref<2x1x64xf32, #tpu.memory_space<vmem>>, vector<1x1x64xf32>
    %46 = vector.shape_cast %45 : vector<1x1x64xf32> to vector<1x64xf32>
    %47 = arith.mulf %44, %44 : vector<8x64xf32>
    %cst_24 = arith.constant dense<0.000000e+00> : vector<8xf32>
    %48 = vector.multi_reduction <add>, %47, %cst_24 [1] : vector<8x64xf32> to vector<8xf32>
    %49 = vector.shape_cast %48 : vector<8xf32> to vector<8x1xf32>
    %cst_25 = arith.constant 6.400000e+01 : f32
    %50 = vector.broadcast %cst_25 : f32 to vector<8x1xf32>
    %51 = arith.divf %49, %50 : vector<8x1xf32>
    %cst_26 = arith.constant 9.99999997E-7 : f32
    %52 = vector.broadcast %cst_26 : f32 to vector<8x1xf32>
    %53 = arith.addf %51, %52 : vector<8x1xf32>
    %54 = math.rsqrt %53 : vector<8x1xf32>
    %55 = vector.broadcast %54 : vector<8x1xf32> to vector<8x64xf32>
    %56 = arith.mulf %44, %55 : vector<8x64xf32>
    %57 = vector.broadcast %46 : vector<1x64xf32> to vector<8x64xf32>
    %58 = arith.mulf %57, %56 : vector<8x64xf32>
    %59 = arith.truncf %58 : vector<8x64xf32> to vector<8x64xbf16>
    %c0_27 = arith.constant 0 : index
    %c0_28 = arith.constant 0 : index
    %c0_29 = arith.constant 0 : index
    %60 = vector.load %arg6[%c0_27, %c0_28, %c0_29] : memref<2x64x512xbf16, #tpu.memory_space<vmem>>, vector<1x64x512xbf16>
    %61 = vector.shape_cast %60 : vector<1x64x512xbf16> to vector<64x512xbf16>
    %cst_30 = arith.constant dense<0.000000e+00> : vector<8x512xf32>
    %62 = tpu.matmul %59, %61, %cst_30 {dimension_numbers = #tpu.dot_dimension_numbers<[1], [0], [0], [1], [0, 0, 1, 1], [], []>} : vector<8x64xbf16>, vector<64x512xbf16>, vector<8x512xf32> -> vector<8x512xf32>
    %63 = vector.extract_strided_slice %62 {offsets = [0, 0], sizes = [8, 256], strides = [1, 1]} : vector<8x512xf32> to vector<8x256xf32>
    %64 = vector.extract_strided_slice %62 {offsets = [0, 256], sizes = [8, 256], strides = [1, 1]} : vector<8x512xf32> to vector<8x256xf32>
    %65 = arith.negf %63 : vector<8x256xf32>
    %66 = math.exp %65 : vector<8x256xf32>
    %cst_31 = arith.constant 1.000000e+00 : f32
    %67 = vector.broadcast %cst_31 : f32 to vector<8x256xf32>
    %68 = arith.addf %67, %66 : vector<8x256xf32>
    %69 = arith.divf %67, %68 : vector<8x256xf32>
    %70 = arith.mulf %63, %69 : vector<8x256xf32>
    %71 = arith.mulf %70, %64 : vector<8x256xf32>
    %72 = arith.truncf %71 : vector<8x256xf32> to vector<8x256xbf16>
    %c0_32 = arith.constant 0 : index
    %c0_33 = arith.constant 0 : index
    %c0_34 = arith.constant 0 : index
    %73 = vector.load %arg7[%c0_32, %c0_33, %c0_34] : memref<2x256x64xbf16, #tpu.memory_space<vmem>>, vector<1x256x64xbf16>
    %74 = vector.shape_cast %73 : vector<1x256x64xbf16> to vector<256x64xbf16>
    %cst_35 = arith.constant dense<0.000000e+00> : vector<8x64xf32>
    %75 = tpu.matmul %72, %74, %cst_35 {dimension_numbers = #tpu.dot_dimension_numbers<[1], [0], [0], [1], [0, 0, 1, 1], [], []>} : vector<8x256xbf16>, vector<256x64xbf16>, vector<8x64xf32> -> vector<8x64xf32>
    %76 = arith.addf %44, %75 : vector<8x64xf32>
    %c1 = arith.constant 1 : index
    %c0_36 = arith.constant 0 : index
    %c0_37 = arith.constant 0 : index
    %77 = vector.load %arg2[%c1, %c0_36, %c0_37] : memref<2x1x64xf32, #tpu.memory_space<vmem>>, vector<1x1x64xf32>
    %78 = vector.shape_cast %77 : vector<1x1x64xf32> to vector<1x64xf32>
    %79 = arith.mulf %76, %76 : vector<8x64xf32>
    %cst_38 = arith.constant dense<0.000000e+00> : vector<8xf32>
    %80 = vector.multi_reduction <add>, %79, %cst_38 [1] : vector<8x64xf32> to vector<8xf32>
    %81 = vector.shape_cast %80 : vector<8xf32> to vector<8x1xf32>
    %cst_39 = arith.constant 6.400000e+01 : f32
    %82 = vector.broadcast %cst_39 : f32 to vector<8x1xf32>
    %83 = arith.divf %81, %82 : vector<8x1xf32>
    %cst_40 = arith.constant 9.99999997E-7 : f32
    %84 = vector.broadcast %cst_40 : f32 to vector<8x1xf32>
    %85 = arith.addf %83, %84 : vector<8x1xf32>
    %86 = math.rsqrt %85 : vector<8x1xf32>
    %87 = vector.broadcast %86 : vector<8x1xf32> to vector<8x64xf32>
    %88 = arith.mulf %76, %87 : vector<8x64xf32>
    %89 = vector.broadcast %78 : vector<1x64xf32> to vector<8x64xf32>
    %90 = arith.mulf %89, %88 : vector<8x64xf32>
    %91 = arith.truncf %90 : vector<8x64xf32> to vector<8x64xbf16>
    %c1_41 = arith.constant 1 : index
    %c0_42 = arith.constant 0 : index
    %c0_43 = arith.constant 0 : index
    %92 = vector.load %arg4[%c1_41, %c0_42, %c0_43] : memref<2x64x384xbf16, #tpu.memory_space<vmem>>, vector<1x64x384xbf16>
    %93 = vector.shape_cast %92 : vector<1x64x384xbf16> to vector<64x384xbf16>
    %cst_44 = arith.constant dense<0.000000e+00> : vector<8x384xf32>
    %94 = tpu.matmul %91, %93, %cst_44 {dimension_numbers = #tpu.dot_dimension_numbers<[1], [0], [0], [1], [0, 0, 1, 1], [], []>} : vector<8x64xbf16>, vector<64x384xbf16>, vector<8x384xf32> -> vector<8x384xf32>
    %95 = vector.extract_strided_slice %94 {offsets = [0, 0], sizes = [8, 128], strides = [1, 1]} : vector<8x384xf32> to vector<8x128xf32>
    %96 = vector.extract_strided_slice %94 {offsets = [0, 128], sizes = [8, 128], strides = [1, 1]} : vector<8x384xf32> to vector<8x128xf32>
    %97 = vector.extract_strided_slice %94 {offsets = [0, 256], sizes = [8, 128], strides = [1, 1]} : vector<8x384xf32> to vector<8x128xf32>
    %98 = arith.mulf %95, %96 : vector<8x128xf32>
    %99 = arith.truncf %98 : vector<8x128xf32> to vector<8x128xbf16>
    %c0_45 = arith.constant 0 : index
    %c0_46 = arith.constant 0 : index
    %100 = vector.load %arg8[%c0_45, %c0_46] : memref<128x128xbf16, #tpu.memory_space<vmem>>, vector<128x128xbf16>
    %cst_47 = arith.constant dense<0.000000e+00> : vector<8x128xf32>
    %101 = tpu.matmul %99, %100, %cst_47 {dimension_numbers = #tpu.dot_dimension_numbers<[1], [0], [0], [1], [0, 0, 1, 1], [], []>} : vector<8x128xbf16>, vector<128x128xbf16>, vector<8x128xf32> -> vector<8x128xf32>
    %102 = arith.negf %101 : vector<8x128xf32>
    %103 = math.exp %102 : vector<8x128xf32>
    %cst_48 = arith.constant 1.000000e+00 : f32
    %104 = vector.broadcast %cst_48 : f32 to vector<8x128xf32>
    %105 = arith.addf %104, %103 : vector<8x128xf32>
    %106 = arith.divf %104, %105 : vector<8x128xf32>
    %107 = arith.mulf %106, %97 : vector<8x128xf32>
    %108 = arith.truncf %107 : vector<8x128xf32> to vector<8x128xbf16>
    %c1_49 = arith.constant 1 : index
    %c0_50 = arith.constant 0 : index
    %c0_51 = arith.constant 0 : index
    %109 = vector.load %arg5[%c1_49, %c0_50, %c0_51] : memref<2x128x64xbf16, #tpu.memory_space<vmem>>, vector<1x128x64xbf16>
    %110 = vector.shape_cast %109 : vector<1x128x64xbf16> to vector<128x64xbf16>
    %cst_52 = arith.constant dense<0.000000e+00> : vector<8x64xf32>
    %111 = tpu.matmul %108, %110, %cst_52 {dimension_numbers = #tpu.dot_dimension_numbers<[1], [0], [0], [1], [0, 0, 1, 1], [], []>} : vector<8x128xbf16>, vector<128x64xbf16>, vector<8x64xf32> -> vector<8x64xf32>
    %112 = arith.addf %76, %111 : vector<8x64xf32>
    %c1_53 = arith.constant 1 : index
    %c0_54 = arith.constant 0 : index
    %c0_55 = arith.constant 0 : index
    %113 = vector.load %arg3[%c1_53, %c0_54, %c0_55] : memref<2x1x64xf32, #tpu.memory_space<vmem>>, vector<1x1x64xf32>
    %114 = vector.shape_cast %113 : vector<1x1x64xf32> to vector<1x64xf32>
    %115 = arith.mulf %112, %112 : vector<8x64xf32>
    %cst_56 = arith.constant dense<0.000000e+00> : vector<8xf32>
    %116 = vector.multi_reduction <add>, %115, %cst_56 [1] : vector<8x64xf32> to vector<8xf32>
    %117 = vector.shape_cast %116 : vector<8xf32> to vector<8x1xf32>
    %cst_57 = arith.constant 6.400000e+01 : f32
    %118 = vector.broadcast %cst_57 : f32 to vector<8x1xf32>
    %119 = arith.divf %117, %118 : vector<8x1xf32>
    %cst_58 = arith.constant 9.99999997E-7 : f32
    %120 = vector.broadcast %cst_58 : f32 to vector<8x1xf32>
    %121 = arith.addf %119, %120 : vector<8x1xf32>
    %122 = math.rsqrt %121 : vector<8x1xf32>
    %123 = vector.broadcast %122 : vector<8x1xf32> to vector<8x64xf32>
    %124 = arith.mulf %112, %123 : vector<8x64xf32>
    %125 = vector.broadcast %114 : vector<1x64xf32> to vector<8x64xf32>
    %126 = arith.mulf %125, %124 : vector<8x64xf32>
    %127 = arith.truncf %126 : vector<8x64xf32> to vector<8x64xbf16>
    %c1_59 = arith.constant 1 : index
    %c0_60 = arith.constant 0 : index
    %c0_61 = arith.constant 0 : index
    %128 = vector.load %arg6[%c1_59, %c0_60, %c0_61] : memref<2x64x512xbf16, #tpu.memory_space<vmem>>, vector<1x64x512xbf16>
    %129 = vector.shape_cast %128 : vector<1x64x512xbf16> to vector<64x512xbf16>
    %cst_62 = arith.constant dense<0.000000e+00> : vector<8x512xf32>
    %130 = tpu.matmul %127, %129, %cst_62 {dimension_numbers = #tpu.dot_dimension_numbers<[1], [0], [0], [1], [0, 0, 1, 1], [], []>} : vector<8x64xbf16>, vector<64x512xbf16>, vector<8x512xf32> -> vector<8x512xf32>
    %131 = vector.extract_strided_slice %130 {offsets = [0, 0], sizes = [8, 256], strides = [1, 1]} : vector<8x512xf32> to vector<8x256xf32>
    %132 = vector.extract_strided_slice %130 {offsets = [0, 256], sizes = [8, 256], strides = [1, 1]} : vector<8x512xf32> to vector<8x256xf32>
    %133 = arith.negf %131 : vector<8x256xf32>
    %134 = math.exp %133 : vector<8x256xf32>
    %cst_63 = arith.constant 1.000000e+00 : f32
    %135 = vector.broadcast %cst_63 : f32 to vector<8x256xf32>
    %136 = arith.addf %135, %134 : vector<8x256xf32>
    %137 = arith.divf %135, %136 : vector<8x256xf32>
    %138 = arith.mulf %131, %137 : vector<8x256xf32>
    %139 = arith.mulf %138, %132 : vector<8x256xf32>
    %140 = arith.truncf %139 : vector<8x256xf32> to vector<8x256xbf16>
    %c1_64 = arith.constant 1 : index
    %c0_65 = arith.constant 0 : index
    %c0_66 = arith.constant 0 : index
    %141 = vector.load %arg7[%c1_64, %c0_65, %c0_66] : memref<2x256x64xbf16, #tpu.memory_space<vmem>>, vector<1x256x64xbf16>
    %142 = vector.shape_cast %141 : vector<1x256x64xbf16> to vector<256x64xbf16>
    %cst_67 = arith.constant dense<0.000000e+00> : vector<8x64xf32>
    %143 = tpu.matmul %140, %142, %cst_67 {dimension_numbers = #tpu.dot_dimension_numbers<[1], [0], [0], [1], [0, 0, 1, 1], [], []>} : vector<8x256xbf16>, vector<256x64xbf16>, vector<8x64xf32> -> vector<8x64xf32>
    %144 = arith.addf %112, %143 : vector<8x64xf32>
    %c0_68 = arith.constant 0 : index
    %c0_69 = arith.constant 0 : index
    %145 = vector.load %arg9[%c0_68, %c0_69] : memref<1x64xf32, #tpu.memory_space<vmem>>, vector<1x64xf32>
    %146 = arith.mulf %144, %144 : vector<8x64xf32>
    %cst_70 = arith.constant dense<0.000000e+00> : vector<8xf32>
    %147 = vector.multi_reduction <add>, %146, %cst_70 [1] : vector<8x64xf32> to vector<8xf32>
    %148 = vector.shape_cast %147 : vector<8xf32> to vector<8x1xf32>
    %cst_71 = arith.constant 6.400000e+01 : f32
    %149 = vector.broadcast %cst_71 : f32 to vector<8x1xf32>
    %150 = arith.divf %148, %149 : vector<8x1xf32>
    %cst_72 = arith.constant 9.99999997E-7 : f32
    %151 = vector.broadcast %cst_72 : f32 to vector<8x1xf32>
    %152 = arith.addf %150, %151 : vector<8x1xf32>
    %153 = math.rsqrt %152 : vector<8x1xf32>
    %154 = vector.broadcast %153 : vector<8x1xf32> to vector<8x64xf32>
    %155 = arith.mulf %144, %154 : vector<8x64xf32>
    %156 = vector.broadcast %145 : vector<1x64xf32> to vector<8x64xf32>
    %157 = arith.mulf %156, %155 : vector<8x64xf32>
    %158 = arith.truncf %157 : vector<8x64xf32> to vector<8x64xbf16>
    %c0_73 = arith.constant 0 : index
    %c0_74 = arith.constant 0 : index
    %159 = vector.load %arg10[%c0_73, %c0_74] : memref<64x128xbf16, #tpu.memory_space<vmem>>, vector<64x128xbf16>
    %cst_75 = arith.constant dense<0.000000e+00> : vector<8x128xf32>
    %160 = tpu.matmul %158, %159, %cst_75 {dimension_numbers = #tpu.dot_dimension_numbers<[1], [0], [0], [1], [0, 0, 1, 1], [], []>} : vector<8x64xbf16>, vector<64x128xbf16>, vector<8x128xf32> -> vector<8x128xf32>
    %c0_76 = arith.constant 0 : index
    %c0_77 = arith.constant 0 : index
    %161 = vector.load %arg11[%c0_76, %c0_77] : memref<8x128xf32, #tpu.memory_space<vmem>>, vector<8x128xf32>
    tpu.vector_store %arg11[%c0_76, %c0_77], %160 {strides = array<i32>} : memref<8x128xf32, #tpu.memory_space<vmem>>, vector<8x128xf32>,
    return
  }
}

</mosaic_0001>

<bundles_post_ra>
// kernel: transformer_forward.1
= control target key start
LH: loop header
LB: loop body
LE: loop exit
PB: predicated region body
PF: predicated region fallthrough
CT: control target
= control target key end

     0   :  { %16 = vsyncpa [#allocation3], 0  ;;  %s3166_s0 = inlined_call_operand.vmem [shape: s32[8,1], index: 0, kind: input, shape index: {}]   ;;  %s3167_s1 = inlined_call_operand.vmem [shape: bf16[128,64], index: 1, kind: input, shape index: {}]   ;;  %s3168_s2 = inlined_call_operand.hbm [shape: f32[2,1,64], index: 2, kind: input, shape index: {}]   ;;  %s3169_s3 = inlined_call_operand.hbm [shape: f32[2,1,64], index: 3, kind: input, shape index: {}]   ;;  %s3170_s4 = inlined_call_operand.vmem [shape: bf16[2,64,384], index: 4, kind: input, shape index: {}]   ;;  %s3171_s5 = inlined_call_operand.vmem [shape: bf16[2,128,64], index: 5, kind: input, shape index: {}]   ;;  %s3172_s6 = inlined_call_operand.vmem [shape: bf16[2,64,512], index: 6, kind: input, shape index: {}]   ;;  %s3173_s7 = inlined_call_operand.vmem [shape: bf16[2,256,64], index: 7, kind: input, shape index: {}]   ;;  %s3174_s8 = inlined_call_operand.vmem [shape: bf16[128,128], index: 8, kind: input, shape index: {}]   ;;  %s3175_s9 = inlined_call_operand.vmem [shape: f32[1,64], index: 9, kind: input, shape index: {}]   ;;  %s3176_s10 = inlined_call_operand.hbm [shape: bf16[64,128], index: 10, kind: input, shape index: {}]   ;;  %s3177_s11 = inlined_call_operand.vmem [shape: f32[8,128], index: 11, kind: output, shape index: {}]  }
   0x1   :  { %17 = vsyncpa [#allocation5], 0  ;;  %s2538_s17 = smov [#allocation4]   ;;  %s2539_s19 = smov [#allocation2]  }
   0x2   :  { %s39_s18 = sshll.u32 %s2538_s17, 4  ;;  %s27_s20 = sshll.u32 %s2539_s19, 4  ;;  %s40_s18 = int_to_ptr.vmem [resolvable:$true] %s39_s18  ;;  %s2609_s20 = int_to_ptr.vmem [resolvable:$true] %s27_s20 }
   0x3   :  { %s2468_s23 = scalar_lea.hbm %s3169_s3, 32 }
   0x4   :  { %p2469_p0 = scmp.ne.s32.totalorder %s3169_s3, %s2468_s23  ;;  %p2472_p1 = scmp.lt.u32.totalorder %s2468_s23, %s3169_s3 }
   0x6   :  { %p2474_p2 = pnand %p2472_p1, %p2469_p0 }
   0x8   :  { %2477 = shalt.err (!%p2474_p2)
}
   0x9   :  { %s2478_s28 = scalar_lea.vmem %s40_s18, 32  ;;  %p2483_p4 = scmp.lt.s32.totalorder %s40_s18, %s40_s18 }
   0xa   :  { %p2479_p3 = scmp.ne.s32.totalorder %s40_s18, %s2478_s28  ;;  %p2484_p5 = scmp.lt.s32.totalorder %s2478_s28, %s2478_s28 }
   0xc   :  { %p2485_p6 = por %p2484_p5, %p2483_p4 }
   0xe   :  { %p2486_p7 = pnand %p2485_p6, %p2479_p3 }
  0x10   :  { %2489 = shalt.err (!%p2486_p7)
}
  0x11   :  { %s2540_s29 = smov 16   ;;  %s2541_s30 = smov 1  }
  0x12   :  { %45 = dma.hbm_to_vmem [thread:$0]  %s3169_s3, 32, %s40_s18, [#allocation5], %s2540_s29, %s2540_s29, %s2541_s30  }
  0x13   :  { %s2490_s16 = scalar_lea.hbm %s3168_s2, 32 }
  0x14   :  { %p2491_p8 = scmp.ne.s32.totalorder %s3168_s2, %s2490_s16  ;;  %p2494_p9 = scmp.lt.u32.totalorder %s2490_s16, %s3168_s2 }
  0x16   :  { %p2496_p10 = pnand %p2494_p9, %p2491_p8 }
  0x18   :  { %2499 = shalt.err (!%p2496_p10)
}
  0x19   :  { %s2500_s23 = scalar_lea.vmem %s2609_s20, 32  ;;  %p2505_p12 = scmp.lt.s32.totalorder %s2609_s20, %s2609_s20 }
  0x1a   :  { %p2501_p11 = scmp.ne.s32.totalorder %s2609_s20, %s2500_s23  ;;  %p2506_p13 = scmp.lt.s32.totalorder %s2500_s23, %s2500_s23 }
  0x1c   :  { %p2507_p0 = por %p2506_p13, %p2505_p12 }
  0x1e   :  { %p2508_p1 = pnand %p2507_p0, %p2501_p11 }
  0x20   :  { %2511 = shalt.err (!%p2508_p1)
}
  0x21   :  { %33 = dma.hbm_to_vmem [thread:$0]  %s3168_s2, 32, %s2609_s20, [#allocation3], %s2540_s29, %s2540_s29, %s2541_s30  }
  0x22   :  { %s2542_s24 = smov [#allocation6]   ;;  %s2512_s28 = scalar_lea.hbm %s3176_s10, 512 }
  0x23   :  { %s63_s25 = sshll.u32 %s2542_s24, 4  ;;  %p2513_p2 = scmp.ne.s32.totalorder %s3176_s10, %s2512_s28  ;;  %s64_s25 = int_to_ptr.vmem [resolvable:$true] %s63_s25 }
  0x24   :  { %p2516_p3 = scmp.lt.u32.totalorder %s2512_s28, %s3176_s10 }
  0x26   :  { %p2518_p4 = pnand %p2516_p3, %p2513_p2 }
  0x28   :  { %2521 = shalt.err (!%p2518_p4)
}
  0x29   :  { %s2522_s16 = scalar_lea.vmem %s64_s25, 512  ;;  %p2527_p6 = scmp.lt.s32.totalorder %s64_s25, %s64_s25 }
  0x2a   :  { %p2523_p5 = scmp.ne.s32.totalorder %s64_s25, %s2522_s16  ;;  %p2528_p7 = scmp.lt.s32.totalorder %s2522_s16, %s2522_s16 }
  0x2c   :  { %p2529_p8 = por %p2528_p7, %p2527_p6 }
  0x2e   :  { %p2530_p9 = pnand %p2529_p8, %p2523_p5 }
  0x30   :  { %2533 = shalt.err (!%p2530_p9)
}
  0x31   :  { %s2543_s2 = smov 64   ;;  %s2544_s20 = smov 4  }
  0x32   :  { %69 = dma.hbm_to_vmem [thread:$0]  %s3176_s10, 512, %s64_s25, [#allocation5], %s2543_s2, %s2543_s2, %s2544_s20  }
  0x33   :  { %2534 = dma.done.wait [#allocation3], 32  }
  0x34   :  { %2535 = vsyncadd [#allocation3], 4294967264 }
  0x35   :  { %2536 = dma.done.wait [#allocation5], 544  }
  0x36   :  { %2537 = vsyncadd [#allocation5], 4294966752  ;;  %v2545_v0 = vmov 0   ;;  %v2546_v1 = vmov 0.0   ;;  %v80_v2 = vld [vmem:[%s3166_s0] sm:$0xff]  ;;  %vm2547_vm0 = vmmov 0   ;;  %v81_v11 = vlaneseq }
  0x37   :  { %2285 = vset.pattern.permute.xlu0 %v2545_v0  ;;  %2138 = vmatprep.subr.bf16.mxu0 %v2546_v1  ;;  %v2286_v3 = vld [vmem:[%s3167_s1] sm:$0xff]   ;;  %v2287_v4 = vld [vmem:[%s3167_s1 + $0x8] sm:$0xff]   ;;  %v2288_v5 = vld [vmem:[%s3167_s1 + $0x10] sm:$0xff]   ;;  %v2548_v14 = vmov 1.0|1.0   ;;  %vm196_vm3 = vcmask 523264  }
  0x38   :  { %328 = vmatprep.mubr.bf16.mxu1 %v2545_v0  ;;  %84 = vperm.xlu0 %2285, %v80_v2   ;;  %v2289_v6 = vld [vmem:[%s3167_s1 + $0x18] sm:$0xff]   ;;  %v2290_v7 = vld [vmem:[%s3167_s1 + $0x20] sm:$0xff]   ;;  %v2291_v8 = vld [vmem:[%s3167_s1 + $0x28] sm:$0xff]   ;;  %v82_v12 = vand.u32 127, %v81_v11 }
  0x39   :  { %2154 = vmatprep.mubr.msk.bf16.mxu0 %vm2547_vm0, %v2546_v1  ;;  %2139 = vmatpush3.bf16.msra.mxu0 %v2286_v3  ;;  %v2292_v9 = vld [vmem:[%s3167_s1 + $0x30] sm:$0xff]   ;;  %v2293_v10 = vld [vmem:[%s3167_s1 + $0x38] sm:$0xff]   ;;  %v2296_v22 = vld [vmem:[%s3170_s4] ss:$12 sps:$4 sm:$0xff]  }
  0x3a   :  { %2140 = vmatprep.subr.bf16.mxu0 %v2546_v1  ;;  %v2294_v21 = vld [vmem:[%s3170_s4 + $0x4] ss:$12 sps:$4 sm:$0xff]   ;;  %v2297_v23 = vld [vmem:[%s3170_s4 + $0x1c] ss:$12 sps:$4 sm:$0xff]   ;;  %v2300_v25 = vld [vmem:[%s3170_s4 + $0x34] ss:$12 sps:$4 sm:$0xff]  }
  0x3b   :  { %296 = vmatprep.subr.bf16.mxu1 %v2294_v21  ;;  %v2299_v24 = vld [vmem:[%s3170_s4 + $0x18] ss:$12 sps:$4 sm:$0xff]   ;;  %v2302_v26 = vld [vmem:[%s3170_s4 + $0x30] ss:$12 sps:$4 sm:$0xff]   ;;  %v2305_v28 = vld [vmem:[%s3170_s4 + $0x48] ss:$12 sps:$4 sm:$0xff]  }
  0x3c   :  { %297 = vmatpush1.bf16.msra.mxu1 %v2296_v22  ;;  %v2303_v27 = vld [vmem:[%s3170_s4 + $0x4c] ss:$12 sps:$4 sm:$0xff]   ;;  %v2727_v29 = vld [vmem:[%s3174_s8] sm:$0xff]   ;;  %v2740_v31 = vld [vmem:[%s3174_s8 + $0x10] sm:$0xff]  }
  0x3d   :  { %2141 = vmatpush3.bf16.msra.mxu0 %v2287_v4  ;;  %298 = vmatprep.subr.bf16.mxu1 %v2297_v23  ;;  %v2733_v30 = vld [vmem:[%s3174_s8 + $0x8] sm:$0xff]   ;;  %v2747_v32 = vld [vmem:[%s3174_s8 + $0x18] sm:$0xff]   ;;  %v2754_v33 = vld [vmem:[%s3174_s8 + $0x20] sm:$0xff]  }
  0x3e   :  { %2142 = vmatprep.subr.bf16.mxu0 %v2546_v1  ;;  %v2761_v34 = vld [vmem:[%s3174_s8 + $0x28] sm:$0xff]   ;;  %v2768_v35 = vld [vmem:[%s3174_s8 + $0x30] sm:$0xff]   ;;  %v2308_v46 = vld [vmem:[%s3170_s4 + $0x38] ss:$12 sps:$4 sm:$0xff]  }
  0x3f   :  { %v1818_v40 = vld [vmem:[#allocation2] ss:$0 sm:$0xff]  ;;  %v2307_v45 = vld [vmem:[%s3170_s4 + $0x20] ss:$12 sps:$4 sm:$0xff]   ;;  %v2309_v47 = vld [vmem:[%s3170_s4 + $0x50] ss:$12 sps:$4 sm:$0xff]  }
  0x40   :  { %299 = vmatpush1.bf16.msra.mxu1 %v2299_v24  ;;  %v2306_v43 = vld [vmem:[%s3170_s4 + $0x8] ss:$12 sps:$4 sm:$0xff]   ;;  %v2799_v48 = vld [vmem:[%s3174_s8 + $0x38] sm:$0xff]   ;;  %v2318_v59 = vld [vmem:[%s3171_s5] sm:$0xff]  }
  0x41   :  { %2143 = vmatpush3.bf16.msra.mxu0 %v2288_v5  ;;  %300 = vmatprep.subr.bf16.mxu1 %v2300_v25  ;;  %v2319_v60 = vld [vmem:[%s3171_s5 + $0x8] sm:$0xff]   ;;  %v2320_v61 = vld [vmem:[%s3171_s5 + $0x10] sm:$0xff]   ;;  %v2321_v62 = vld [vmem:[%s3171_s5 + $0x18] sm:$0xff]  }
  0x42   :  { %2144 = vmatprep.subr.bf16.mxu0 %v2546_v1  ;;  %v2322_v63 = vld [vmem:[%s3171_s5 + $0x20] sm:$0xff]   ;;  %v2323_v2 = vld [vmem:[%s3171_s5 + $0x28] sm:$0xff]   ;;  %v2324_v3 = vld [vmem:[%s3171_s5 + $0x30] sm:$0xff]  }
  0x43   :  { %v2325_v4 = vld [vmem:[%s3171_s5 + $0x38] sm:$0xff]   ;;  %v2328_v23 = vld [vmem:[%s3172_s6 + $0x4] ss:$16 sps:$4 sm:$0xff]  }
  0x44   :  { %301 = vmatpush1.bf16.msra.mxu1 %v2302_v26  ;;  %v2331_v24 = vld [vmem:[%s3172_s6 + $0xc] ss:$16 sps:$4 sm:$0xff]   ;;  %v2329_v25 = vld [vmem:[%s3172_s6 + $0x8] ss:$16 sps:$4 sm:$0xff]   ;;  %v2334_v26 = vld [vmem:[%s3172_s6 + $0x24] ss:$16 sps:$4 sm:$0xff]  }
  0x45   :  { %2145 = vmatpush3.bf16.msra.mxu0 %v2289_v6  ;;  %302 = vmatprep.subr.bf16.mxu1 %v2303_v27  ;;  %v2337_v27 = vld [vmem:[%s3172_s6 + $0x2c] ss:$16 sps:$4 sm:$0xff]  }
  0x46   :  { %2146 = vmatprep.subr.bf16.mxu0 %v2546_v1 }
  0x48   :  { %303 = vmatpush1.bf16.msra.mxu1 %v2305_v28  ;;  %v2332_v28 = vld [vmem:[%s3172_s6 + $0x20] ss:$16 sps:$4 sm:$0xff]  }
  0x49   :  { %2147 = vmatpush3.bf16.msra.mxu0 %v2290_v7  ;;  %2158 = vmatprep.subr.bf16.mxu1 %v2546_v1 }
  0x4a   :  { %2148 = vmatprep.subr.bf16.mxu0 %v2546_v1 }
  0x4d   :  { %2149 = vmatpush3.bf16.msra.mxu0 %v2291_v8 }
  0x4e   :  { %2150 = vmatprep.subr.bf16.mxu0 %v2546_v1 }
  0x51   :  { %2151 = vmatpush3.bf16.msra.mxu0 %v2292_v9 }
  0x52   :  { %2152 = vmatprep.subr.bf16.mxu0 %v2546_v1 }
  0x55   :  { %2153 = vmatpush3.bf16.msra.mxu0 %v2293_v10 }
  0x56   :  { %2170 = vmatprep.subr.bf16.mxu0 %v2546_v1 }
  0xb7   :  { %v85_v13 = vpop.permute.xlu0 %84 }
  0xb8   :  { %vm86_vm1 = vcmp.eq.s32.totalorder %v82_v12, %v85_v13 }
  0xb9   :  { %vm1816_vm2 = vmpackc.low %vm86_vm1, %vm86_vm1 }
  0xba   :  { %2155 = vmatmul.mubr.msk.bf16.vlgmr.msra.gmra.mrb[0].mxu0 %vm1816_vm2, %v2548_v14 }
  0xbb   :  { %2186 = vmatprep.mubr.msk.bf16.mxu0 %vm2547_vm0, %v2546_v1  ;;  %2171 = vmatpush3.bf16.msra.mxu0 %v2727_v29 }
  0xbc   :  { %2172 = vmatprep.subr.bf16.mxu0 %v2546_v1 }
  0xbf   :  { %2173 = vmatpush3.bf16.msra.mxu0 %v2733_v30 }
  0xc0   :  { %2174 = vmatprep.subr.bf16.mxu0 %v2546_v1 }
  0xc3   :  { %2175 = vmatpush3.bf16.msra.mxu0 %v2740_v31 }
  0xc4   :  { %2176 = vmatprep.subr.bf16.mxu0 %v2546_v1 }
  0xc7   :  { %2177 = vmatpush3.bf16.msra.mxu0 %v2747_v32 }
  0xc8   :  { %2178 = vmatprep.subr.bf16.mxu0 %v2546_v1 }
  0xcb   :  { %2179 = vmatpush3.bf16.msra.mxu0 %v2754_v33 }
  0xcc   :  { %2180 = vmatprep.subr.bf16.mxu0 %v2546_v1 }
  0xcf   :  { %2181 = vmatpush3.bf16.msra.mxu0 %v2761_v34 }
  0xd0   :  { %2182 = vmatprep.subr.bf16.mxu0 %v2546_v1 }
  0xd3   :  { %2183 = vmatpush3.bf16.msra.mxu0 %v2768_v35 }
  0xd4   :  { %2184 = vmatprep.subr.bf16.mxu0 %v2546_v1 }
  0xd7   :  { %2185 = vmatpush3.bf16.msra.mxu0 %v2799_v48 }
  0xd8   :  { %712 = vmatprep.subr.bf16.mxu0 %v2328_v23 }
 0x18d   :  { %v2694_v15 = vpop.f32.mrb[0].mxu0 }
 0x18e   :  { %v2156_v16 = vpop.f32.mrb[1].mxu0  ;;  %v195_v17 = vmul.f32 %v2694_v15, %v2694_v15 }
 0x18f   :  { %v191_v18 = vpop.f32.mrb[2].mxu0 }
 0x190   :  { %v2157_v19 = vpop.f32.mrb[3].mxu0  ;;  %v197_v20 = vsel %vm196_vm3, %v195_v17, 0.0 }
 0x191   :  { %198 = vadd.xlane.f32.xlu0 %v197_v20 }
 0x21e   :  { %v199_v36 = vpop.xlane.xlu0 %198 }
 0x21f   :  { %v201_v37 = vmul.f32 0.015625, %v199_v36  ;;  %v2335_v36 = vld [vmem:[%s3172_s6 + $0x28] ss:$16 sps:$4 sm:$0xff]  }
 0x221   :  { %v202_v38 = vadd.f32 1e-06, %v201_v37  ;;  %v2340_v37 = vld [vmem:[%s3172_s6 + $0x44] ss:$16 sps:$4 sm:$0xff]  }
 0x223   :  { %2434 = vrsqrt.f32 %v202_v38  ;;  %v2343_v38 = vld [vmem:[%s3172_s6 + $0x4c] ss:$16 sps:$4 sm:$0xff]  }
 0x22d   :  { %v2435_v39 = vpop.eup %2434 }
 0x22e   :  { %v204_v41 = vmul.f32 %v2435_v39, %v2694_v15  ;;  %v2338_v39 = vld [vmem:[%s3172_s6 + $0x40] ss:$16 sps:$4 sm:$0xff]  }
 0x230   :  { %v211_v42 = vmul.f32 %v1818_v40, %v204_v41  ;;  %v2341_v40 = vld [vmem:[%s3172_s6 + $0x48] ss:$16 sps:$4 sm:$0xff]   ;;  %v2344_v41 = vld [vmem:[%s3172_s6 + $0x60] ss:$16 sps:$4 sm:$0xff]  }
 0x232   :  { %v212_v44 = vpack.c.bf16 %v211_v42, %v211_v42  ;;  %v2346_v42 = vld [vmem:[%s3172_s6 + $0x64] ss:$16 sps:$4 sm:$0xff]  }
 0x234   :  { %1831 = vmatmul.mubr.msk.bf16.vlgmr.msra.gmra.mrb[0].mxu1 %vm196_vm3, %v212_v44 }
 0x235   :  { %2159 = vmatpush3.bf16.msra.mxu1 %v2306_v43  ;;  %2166 = vmatprep.mubr.msk.bf16.mxu1 %vm2547_vm0, %v2546_v1  ;;  %v2347_v43 = vld [vmem:[%s3172_s6 + $0x68] ss:$16 sps:$4 sm:$0xff]  }
 0x236   :  { %2160 = vmatprep.subr.bf16.mxu1 %v2546_v1 }
 0x239   :  { %2161 = vmatpush3.bf16.msra.mxu1 %v2307_v45 }
 0x23a   :  { %2162 = vmatprep.subr.bf16.mxu1 %v2546_v1 }
 0x23d   :  { %2163 = vmatpush3.bf16.msra.mxu1 %v2308_v46 }
 0x23e   :  { %2164 = vmatprep.subr.bf16.mxu1 %v2546_v1 }
 0x241   :  { %2165 = vmatpush3.bf16.msra.mxu1 %v2309_v47 }
 0x242   :  { %2190 = vmatprep.subr.bf16.mxu1 %v2546_v1 }
 0x244   :  { %2167 = vmatmul.mubr.msk.bf16.vlgmr.msra.gmra.mrb[4].mxu1 %vm196_vm3, %v212_v44  ;;  %v2349_v44 = vld [vmem:[%s3172_s6 + $0x6c] ss:$16 sps:$4 sm:$0xff]  }
 0x245   :  { %2206 = vmatprep.mubr.msk.bf16.mxu1 %vm2547_vm0, %v2546_v1  ;;  %2191 = vmatpush3.bf16.msra.mxu1 %v2318_v59  ;;  %v2355_v59 = vld [vmem:[%s3173_s7 + $0x10] sm:$0xff]  }
 0x246   :  { %2192 = vmatprep.subr.bf16.mxu1 %v2546_v1 }
 0x249   :  { %2193 = vmatpush3.bf16.msra.mxu1 %v2319_v60  ;;  %v2356_v60 = vld [vmem:[%s3173_s7 + $0x58] sm:$0xff]  }
 0x24a   :  { %2194 = vmatprep.subr.bf16.mxu1 %v2546_v1 }
 0x24d   :  { %2195 = vmatpush3.bf16.msra.mxu1 %v2320_v61  ;;  %v2357_v61 = vld [vmem:[%s3173_s7 + $0x18] sm:$0xff]  }
 0x24e   :  { %2196 = vmatprep.subr.bf16.mxu1 %v2546_v1 }
 0x251   :  { %2197 = vmatpush3.bf16.msra.mxu1 %v2321_v62  ;;  %v2358_v62 = vld [vmem:[%s3173_s7 + $0x60] sm:$0xff]  }
 0x252   :  { %2198 = vmatprep.subr.bf16.mxu1 %v2546_v1 }
 0x255   :  { %2199 = vmatpush3.bf16.msra.mxu1 %v2322_v63  ;;  %v2359_v63 = vld [vmem:[%s3173_s7 + $0x20] sm:$0xff]  }
 0x256   :  { %2200 = vmatprep.subr.bf16.mxu1 %v2546_v1 }
 0x259   :  { %2201 = vmatpush3.bf16.msra.mxu1 %v2323_v2  ;;  %v2360_v2 = vld [vmem:[%s3173_s7 + $0x68] sm:$0xff]  }
 0x25a   :  { %2202 = vmatprep.subr.bf16.mxu1 %v2546_v1 }
 0x25d   :  { %2203 = vmatpush3.bf16.msra.mxu1 %v2324_v3  ;;  %v2361_v3 = vld [vmem:[%s3173_s7 + $0x28] sm:$0xff]  }
 0x25e   :  { %2204 = vmatprep.subr.bf16.mxu1 %v2546_v1 }
 0x261   :  { %2205 = vmatpush3.bf16.msra.mxu1 %v2325_v4  ;;  %v2362_v4 = vld [vmem:[%s3173_s7 + $0x70] sm:$0xff]  }
 0x262   :  { %753 = vmatprep.subr.bf16.mxu1 %v2331_v24 }
 0x307   :  { %v330_v49 = vpop.f32.mrb[0].mxu1 }
 0x308   :  { %v332_v50 = vpop.f32.mrb[1].mxu1 }
 0x309   :  { %v377_v51 = vmul.f32 %v332_v50, %v330_v49  ;;  %v334_v52 = vpop.f32.mrb[2].mxu1  ;;  %v1850_v50 = vld [vmem:[#allocation4] ss:$0 sm:$0xff] }
 0x30a   :  { %v335_v53 = vpop.f32.mrb[3].mxu1 }
 0x30b   :  { %v378_v54 = vpack.c.bf16 %v377_v51, %v377_v51 }
 0x30d   :  { %2187 = vmatmul.mubr.bf16.vlgmr.msra.gmra.mrb[4].mxu0 %v378_v54  ;;  %v2350_v54 = vld [vmem:[%s3173_s7 + $0x40] sm:$0xff]  }
 0x30e   :  { %744 = vmatprep.mubr.bf16.mxu0 %v2545_v0 }
 0x317   :  { %v371_v55 = vpop.f32.mrb[4].mxu1 }
 0x318   :  { %v2168_v56 = vpop.f32.mrb[5].mxu1 }
 0x319   :  { %v374_v57 = vpop.f32.mrb[6].mxu1  ;;  %v2352_v56 = vld [vmem:[%s3173_s7 + $0x48] sm:$0xff]  }
 0x31a   :  { %v2169_v58 = vpop.f32.mrb[7].mxu1  ;;  %v2353_v57 = vld [vmem:[%s3173_s7 + $0x8] sm:$0xff]  }
 0x31b   :  { %v2354_v58 = vld [vmem:[%s3173_s7 + $0x50] sm:$0xff]  }
 0x3e0   :  { %v477_v5 = vpop.f32.mrb[4].mxu0 }
 0x3e1   :  { %v1841_v6 = vmul.f32 -1.442695, %v477_v5  ;;  %v2188_v7 = vpop.f32.mrb[5].mxu0  ;;  %v2363_v5 = vld [vmem:[%s3173_s7 + $0x30] sm:$0xff]  }
 0x3e2   :  { %v480_v8 = vpop.f32.mrb[6].mxu0  ;;  %v2365_v7 = vld [vmem:[%s3173_s7 + $0x38] sm:$0xff]  }
 0x3e3   :  { %2436 = vpow2.f32 %v1841_v6  ;;  %v2189_v9 = vpop.f32.mrb[7].mxu0  ;;  %v2364_v6 = vld [vmem:[%s3173_s7 + $0x78] sm:$0xff]  }
 0x3ed   :  { %v2437_v10 = vpop.eup %2436 }
 0x3ee   :  { %v486_v11 = vadd.f32 1.0, %v2437_v10 }
 0x3f0   :  { %2438 = vrcp.f32 %v486_v11 }
 0x3fa   :  { %v2439_v12 = vpop.eup %2438 }
 0x3fb   :  { %v489_v13 = vmul.f32 %v2439_v12, %v371_v55  ;;  %v2351_v55 = vld [vmem:[%s3173_s7] sm:$0xff]  }
 0x3fd   :  { %v490_v14 = vpack.c.bf16 %v489_v13, %v489_v13 }
 0x3ff   :  { %2207 = vmatmul.mubr.bf16.vlgmr.msra.gmra.mrb[8].mxu1 %v490_v14 }
 0x400   :  { %785 = vmatprep.mubr.bf16.mxu1 %v2545_v0  ;;  %754 = vmatpush1.bf16.msra.mxu1 %v2329_v25 }
 0x401   :  { %755 = vmatprep.subr.bf16.mxu1 %v2337_v27 }
 0x404   :  { %756 = vmatpush1.bf16.msra.mxu1 %v2335_v36 }
 0x405   :  { %757 = vmatprep.subr.bf16.mxu1 %v2343_v38 }
 0x408   :  { %758 = vmatpush1.bf16.msra.mxu1 %v2341_v40  ;;  %v2369_v40 = vld [vmem:[%s3170_s4 + $0x78] ss:$12 sps:$4 sm:$0xff]  }
 0x409   :  { %759 = vmatprep.subr.bf16.mxu1 %v2349_v44  ;;  %v2377_v44 = vld [vmem:[%s3170_s4 + $0xac] ss:$12 sps:$4 sm:$0xff]  }
 0x40c   :  { %760 = vmatpush1.bf16.msra.mxu1 %v2347_v43  ;;  %v2375_v43 = vld [vmem:[%s3170_s4 + $0xa8] ss:$12 sps:$4 sm:$0xff]  }
 0x4d2   :  { %v589_v16 = vpop.f32.mrb[8].mxu1 }
 0x4d3   :  { %v2836_v17 = vadd.f32 %v589_v16, %v2694_v15  ;;  %v2208_v18 = vpop.f32.mrb[9].mxu1  ;;  %v2326_v15 = vld [vmem:[%s3172_s6] ss:$16 sps:$4 sm:$0xff]  }
 0x4d4   :  { %v592_v19 = vpop.f32.mrb[10].mxu1  ;;  %713 = vmatpush1.bf16.msra.mxu0 %v2326_v15 }
 0x4d5   :  { %v2209_v20 = vpop.f32.mrb[11].mxu1  ;;  %v597_v21 = vmul.f32 %v2836_v17, %v2836_v17  ;;  %714 = vmatprep.subr.bf16.mxu0 %v2334_v26 }
 0x4d7   :  { %v598_v22 = vsel %vm196_vm3, %v597_v21, 0.0 }
 0x4d8   :  { %599 = vadd.xlane.f32.xlu1 %v598_v22  ;;  %715 = vmatpush1.bf16.msra.mxu0 %v2332_v28 }
 0x4d9   :  { %716 = vmatprep.subr.bf16.mxu0 %v2340_v37 }
 0x4dc   :  { %717 = vmatpush1.bf16.msra.mxu0 %v2338_v39 }
 0x4dd   :  { %718 = vmatprep.subr.bf16.mxu0 %v2346_v42  ;;  %v2372_v42 = vld [vmem:[%s3170_s4 + $0x90] ss:$12 sps:$4 sm:$0xff]  }
 0x4e0   :  { %719 = vmatpush1.bf16.msra.mxu0 %v2344_v41  ;;  %v2374_v41 = vld [vmem:[%s3170_s4 + $0x94] ss:$12 sps:$4 sm:$0xff]  }
 0x4e1   :  { %2066 = vmatprep.subr.bf16.mxu0 %v2350_v54 }
 0x565   :  { %v600_v45 = vpop.xlane.xlu1 %599 }
 0x566   :  { %v601_v46 = vmul.f32 0.015625, %v600_v45 }
 0x568   :  { %v602_v47 = vadd.f32 1e-06, %v601_v46 }
 0x56a   :  { %2440 = vrsqrt.f32 %v602_v47 }
 0x574   :  { %v2441_v49 = vpop.eup %2440 }
 0x575   :  { %v604_v51 = vmul.f32 %v2441_v49, %v2836_v17 }
 0x577   :  { %v611_v52 = vmul.f32 %v1850_v50, %v604_v51  ;;  %v1887_v50 = vld [vmem:[#allocation2 + $0x1] ss:$0 sm:$0xff] }
 0x579   :  { %v612_v53 = vpack.c.bf16 %v611_v52, %v611_v52 }
 0x57b   :  { %1867 = vmatmul.mubr.msk.bf16.vlgmr.msra.gmra.mrb[8].mxu0 %vm196_vm3, %v612_v53  ;;  %1868 = vmatmul.mubr.msk.bf16.vlgmr.msra.gmra.mrb[12].mxu1 %vm196_vm3, %v612_v53  ;;  %v2378_v53 = vld [vmem:[%s3170_s4 + $0x68] ss:$12 sps:$4 sm:$0xff]  }
 0x57c   :  { %1115 = vmatprep.mubr.bf16.mxu1 %v2545_v0  ;;  %2067 = vmatpush3.bf16.msra.mxu0 %v2351_v55  ;;  %v2379_v55 = vld [vmem:[%s3170_s4 + $0x80] ss:$12 sps:$4 sm:$0xff]  }
 0x57d   :  { %2068 = vmatprep.subr.bf16.mxu0 %v2352_v56  ;;  %v2380_v56 = vld [vmem:[%s3170_s4 + $0x98] ss:$12 sps:$4 sm:$0xff]  }
 0x580   :  { %2069 = vmatpush3.bf16.msra.mxu0 %v2353_v57  ;;  %v2381_v57 = vld [vmem:[%s3170_s4 + $0xb0] ss:$12 sps:$4 sm:$0xff]  }
 0x581   :  { %2070 = vmatprep.subr.bf16.mxu0 %v2354_v58 }
 0x584   :  { %2071 = vmatpush3.bf16.msra.mxu0 %v2355_v59 }
 0x585   :  { %2072 = vmatprep.subr.bf16.mxu0 %v2356_v60 }
 0x588   :  { %2073 = vmatpush3.bf16.msra.mxu0 %v2357_v61 }
 0x589   :  { %2074 = vmatprep.subr.bf16.mxu0 %v2358_v62 }
 0x58c   :  { %2075 = vmatpush3.bf16.msra.mxu0 %v2359_v63 }
 0x58d   :  { %2076 = vmatprep.subr.bf16.mxu0 %v2360_v2 }
 0x590   :  { %2077 = vmatpush3.bf16.msra.mxu0 %v2361_v3 }
 0x591   :  { %2078 = vmatprep.subr.bf16.mxu0 %v2362_v4 }
 0x594   :  { %2079 = vmatpush3.bf16.msra.mxu0 %v2363_v5 }
 0x595   :  { %2080 = vmatprep.subr.bf16.mxu0 %v2364_v6  ;;  %v2382_v6 = vld [vmem:[%s3171_s5 + $0x40] sm:$0xff]  }
 0x598   :  { %2081 = vmatpush3.bf16.msra.mxu0 %v2365_v7  ;;  %v2383_v7 = vld [vmem:[%s3171_s5 + $0x48] sm:$0xff]  }
 0x599   :  { %2222 = vmatprep.subr.bf16.mxu0 %v2546_v1 }
 0x64e   :  { %v746_v8 = vpop.f32.mrb[8].mxu0  ;;  %v787_v9 = vpop.f32.mrb[12].mxu1 }
 0x64f   :  { %v1869_v10 = vmul.f32 -1.442695, %v746_v8  ;;  %v748_v11 = vpop.f32.mrb[9].mxu0  ;;  %v789_v12 = vpop.f32.mrb[13].mxu1 }
 0x650   :  { %v1870_v13 = vmul.f32 -1.442695, %v748_v11  ;;  %v750_v14 = vpop.f32.mrb[10].mxu0  ;;  %v791_v16 = vpop.f32.mrb[14].mxu1 }
 0x651   :  { %2442 = vpow2.f32 %v1869_v10  ;;  %v751_v18 = vpop.f32.mrb[11].mxu0  ;;  %v792_v19 = vpop.f32.mrb[15].mxu1  ;;  %v2386_v10 = vld [vmem:[%s3171_s5 + $0x60] sm:$0xff]  }
 0x652   :  { %2444 = vpow2.f32 %v1870_v13  ;;  %v2389_v13 = vld [vmem:[%s3171_s5 + $0x78] sm:$0xff]  }
 0x65b   :  { %v2443_v20 = vpop.eup %2442 }
 0x65c   :  { %v2445_v21 = vpop.eup %2444  ;;  %v800_v22 = vadd.f32 1.0, %v2443_v20 }
 0x65d   :  { %v801_v23 = vadd.f32 1.0, %v2445_v21 }
 0x65e   :  { %2446 = vrcp.f32 %v800_v22 }
 0x65f   :  { %2448 = vrcp.f32 %v801_v23 }
 0x668   :  { %v2447_v24 = vpop.eup %2446 }
 0x669   :  { %v2449_v15 = vpop.eup %2448  ;;  %v806_v25 = vmul.f32 %v2447_v24, %v746_v8  ;;  %v2384_v8 = vld [vmem:[%s3171_s5 + $0x50] sm:$0xff]  }
 0x66a   :  { %v807_v26 = vmul.f32 %v2449_v15, %v748_v11  ;;  %v2387_v11 = vld [vmem:[%s3171_s5 + $0x68] sm:$0xff]  }
 0x66b   :  { %v808_v27 = vmul.f32 %v806_v25, %v787_v9  ;;  %v2385_v9 = vld [vmem:[%s3171_s5 + $0x58] sm:$0xff]  }
 0x66c   :  { %v809_v28 = vmul.f32 %v807_v26, %v789_v12  ;;  %v2388_v12 = vld [vmem:[%s3171_s5 + $0x70] sm:$0xff]  }
 0x66d   :  { %v810_v37 = vpack.c.bf16 %v808_v27, %v808_v27 }
 0x66e   :  { %v811_v36 = vpack.c.bf16 %v809_v28, %v809_v28 }
 0x670   :  { %972 = vmatprep.mubr.bf16.mxu0 %v811_v36 }
 0x671   :  { %973 = vmatmul.mubr.bf16.vlgmr.msra.gmra.mrb[12].mxu0 %v810_v37 }
 0x672   :  { %2223 = vmatpush3.bf16.msra.mxu0 %v2727_v29  ;;  %2238 = vmatprep.mubr.msk.bf16.mxu0 %vm2547_vm0, %v2546_v1 }
 0x673   :  { %2224 = vmatprep.subr.bf16.mxu0 %v2546_v1 }
 0x676   :  { %2225 = vmatpush3.bf16.msra.mxu0 %v2733_v30 }
 0x677   :  { %2226 = vmatprep.subr.bf16.mxu0 %v2546_v1 }
 0x67a   :  { %2227 = vmatpush3.bf16.msra.mxu0 %v2740_v31 }
 0x67b   :  { %2228 = vmatprep.subr.bf16.mxu0 %v2546_v1 }
 0x67e   :  { %2229 = vmatpush3.bf16.msra.mxu0 %v2747_v32 }
 0x67f   :  { %2230 = vmatprep.subr.bf16.mxu0 %v2546_v1 }
 0x682   :  { %2231 = vmatpush3.bf16.msra.mxu0 %v2754_v33 }
 0x683   :  { %2232 = vmatprep.subr.bf16.mxu0 %v2546_v1 }
 0x686   :  { %2233 = vmatpush3.bf16.msra.mxu0 %v2761_v34 }
 0x687   :  { %2234 = vmatprep.subr.bf16.mxu0 %v2546_v1 }
 0x68a   :  { %2235 = vmatpush3.bf16.msra.mxu0 %v2768_v35  ;;  %v2368_v35 = vld [vmem:[%s3170_s4 + $0x64] ss:$12 sps:$4 sm:$0xff]  }
 0x68b   :  { %2236 = vmatprep.subr.bf16.mxu0 %v2546_v1  ;;  %1083 = vmatprep.subr.bf16.mxu1 %v2368_v35  ;;  %v2404_v35 = vld [vmem:[%s3172_s6 + $0xc4] ss:$16 sps:$4 sm:$0xff]  }
 0x68e   :  { %2237 = vmatpush3.bf16.msra.mxu0 %v2799_v48  ;;  %v2366_v48 = vld [vmem:[%s3170_s4 + $0x60] ss:$12 sps:$4 sm:$0xff]  }
 0x68f   :  { %1084 = vmatpush1.bf16.msra.mxu1 %v2366_v48  ;;  %v2407_v48 = vld [vmem:[%s3172_s6 + $0xcc] ss:$16 sps:$4 sm:$0xff]  }
 0x744   :  { %v2082_v29 = vpop.f32.mrb[12].mxu0 }
 0x745   :  { %v2083_v30 = vpop.f32.mrb[13].mxu0 }
 0x746   :  { %v2084_v31 = vadd.f32 %v2083_v30, %v2082_v29  ;;  %v2085_v32 = vpop.f32.mrb[14].mxu0  ;;  %v2392_v30 = vld [vmem:[%s3172_s6 + $0x84] ss:$16 sps:$4 sm:$0xff]  }
 0x747   :  { %v2086_v38 = vpop.f32.mrb[15].mxu0  ;;  %v2393_v32 = vld [vmem:[%s3172_s6 + $0x88] ss:$16 sps:$4 sm:$0xff]   ;;  %1438 = vmatprep.subr.bf16.mxu0 %v2392_v30 }
 0x748   :  { %v2960_v39 = vadd.f32 %v2084_v31, %v2836_v17  ;;  %v2371_v17 = vld [vmem:[%s3170_s4 + $0x7c] ss:$12 sps:$4 sm:$0xff]   ;;  %v2390_v31 = vld [vmem:[%s3172_s6 + $0x80] ss:$16 sps:$4 sm:$0xff]   ;;  %v2398_v38 = vld [vmem:[%s3172_s6 + $0xa4] ss:$16 sps:$4 sm:$0xff]  }
 0x749   :  { %1085 = vmatprep.subr.bf16.mxu1 %v2371_v17  ;;  %v2402_v17 = vld [vmem:[%s3172_s6 + $0xc0] ss:$16 sps:$4 sm:$0xff]  }
 0x74a   :  { %v983_v33 = vmul.f32 %v2960_v39, %v2960_v39  ;;  %1086 = vmatpush1.bf16.msra.mxu1 %v2369_v40  ;;  %v2405_v40 = vld [vmem:[%s3172_s6 + $0xc8] ss:$16 sps:$4 sm:$0xff]  }
 0x74b   :  { %1087 = vmatprep.subr.bf16.mxu1 %v2374_v41  ;;  %v2408_v41 = vld [vmem:[%s3172_s6 + $0xe0] ss:$16 sps:$4 sm:$0xff]  }
 0x74c   :  { %v984_v34 = vsel %vm196_vm3, %v983_v33, 0.0  ;;  %v2396_v33 = vld [vmem:[%s3172_s6 + $0xa0] ss:$16 sps:$4 sm:$0xff]  }
 0x74d   :  { %985 = vadd.xlane.f32.xlu1 %v984_v34  ;;  %v2399_v34 = vld [vmem:[%s3172_s6 + $0xa8] ss:$16 sps:$4 sm:$0xff]  }
 0x74e   :  { %1088 = vmatpush1.bf16.msra.mxu1 %v2372_v42  ;;  %v2410_v42 = vld [vmem:[%s3172_s6 + $0xe4] ss:$16 sps:$4 sm:$0xff]  }
 0x74f   :  { %1089 = vmatprep.subr.bf16.mxu1 %v2377_v44  ;;  %v2413_v44 = vld [vmem:[%s3172_s6 + $0xec] ss:$16 sps:$4 sm:$0xff]  }
 0x752   :  { %1090 = vmatpush1.bf16.msra.mxu1 %v2375_v43  ;;  %v2411_v43 = vld [vmem:[%s3172_s6 + $0xe8] ss:$16 sps:$4 sm:$0xff]  }
 0x753   :  { %2210 = vmatprep.subr.bf16.mxu1 %v2546_v1 }
 0x7da   :  { %v986_v45 = vpop.xlane.xlu1 %985 }
 0x7db   :  { %v987_v46 = vmul.f32 0.015625, %v986_v45 }
 0x7dd   :  { %v988_v47 = vadd.f32 1e-06, %v987_v46 }
 0x7df   :  { %2450 = vrsqrt.f32 %v988_v47 }
 0x7e9   :  { %v2451_v49 = vpop.eup %2450 }
 0x7ea   :  { %v990_v51 = vmul.f32 %v2451_v49, %v2960_v39 }
 0x7ec   :  { %v997_v52 = vmul.f32 %v1887_v50, %v990_v51  ;;  %v1943_v50 = vld [vmem:[#allocation4 + $0x1] ss:$0 sm:$0xff] }
 0x7ee   :  { %v998_v54 = vpack.c.bf16 %v997_v52, %v997_v52 }
 0x7f0   :  { %1916 = vmatmul.mubr.msk.bf16.vlgmr.msra.gmra.mrb[16].mxu1 %vm196_vm3, %v998_v54 }
 0x7f1   :  { %2211 = vmatpush3.bf16.msra.mxu1 %v2378_v53  ;;  %2218 = vmatprep.mubr.msk.bf16.mxu1 %vm2547_vm0, %v2546_v1 }
 0x7f2   :  { %2212 = vmatprep.subr.bf16.mxu1 %v2546_v1 }
 0x7f5   :  { %2213 = vmatpush3.bf16.msra.mxu1 %v2379_v55  ;;  %v2415_v55 = vld [vmem:[%s3173_s7 + $0x80] sm:$0xff]  }
 0x7f6   :  { %2214 = vmatprep.subr.bf16.mxu1 %v2546_v1 }
 0x7f9   :  { %2215 = vmatpush3.bf16.msra.mxu1 %v2380_v56  ;;  %v2416_v56 = vld [vmem:[%s3173_s7 + $0xc8] sm:$0xff]  }
 0x7fa   :  { %2216 = vmatprep.subr.bf16.mxu1 %v2546_v1 }
 0x7fd   :  { %2217 = vmatpush3.bf16.msra.mxu1 %v2381_v57  ;;  %v2417_v57 = vld [vmem:[%s3173_s7 + $0x88] sm:$0xff]  }
 0x7fe   :  { %2242 = vmatprep.subr.bf16.mxu1 %v2546_v1 }
 0x800   :  { %2219 = vmatmul.mubr.msk.bf16.vlgmr.msra.gmra.mrb[20].mxu1 %vm196_vm3, %v998_v54  ;;  %v2414_v54 = vld [vmem:[%s3173_s7 + $0xc0] sm:$0xff]  }
 0x801   :  { %2258 = vmatprep.mubr.msk.bf16.mxu1 %vm2547_vm0, %v2546_v1  ;;  %2243 = vmatpush3.bf16.msra.mxu1 %v2382_v6  ;;  %v2428_v6 = vld [vmem:[%s3173_s7 + $0xf8] sm:$0xff]  }
 0x802   :  { %2244 = vmatprep.subr.bf16.mxu1 %v2546_v1 }
 0x805   :  { %2245 = vmatpush3.bf16.msra.mxu1 %v2383_v7  ;;  %v2429_v7 = vld [vmem:[%s3173_s7 + $0xb8] sm:$0xff]  }
 0x806   :  { %2246 = vmatprep.subr.bf16.mxu1 %v2546_v1 }
 0x809   :  { %2247 = vmatpush3.bf16.msra.mxu1 %v2384_v8 }
 0x80a   :  { %2248 = vmatprep.subr.bf16.mxu1 %v2546_v1 }
 0x80d   :  { %2249 = vmatpush3.bf16.msra.mxu1 %v2385_v9 }
 0x80e   :  { %2250 = vmatprep.subr.bf16.mxu1 %v2546_v1 }
 0x811   :  { %2251 = vmatpush3.bf16.msra.mxu1 %v2386_v10 }
 0x812   :  { %2252 = vmatprep.subr.bf16.mxu1 %v2546_v1 }
 0x815   :  { %2253 = vmatpush3.bf16.msra.mxu1 %v2387_v11 }
 0x816   :  { %2254 = vmatprep.subr.bf16.mxu1 %v2546_v1 }
 0x819   :  { %2255 = vmatpush3.bf16.msra.mxu1 %v2388_v12 }
 0x81a   :  { %2256 = vmatprep.subr.bf16.mxu1 %v2546_v1 }
 0x81d   :  { %2257 = vmatpush3.bf16.msra.mxu1 %v2389_v13 }
 0x8c3   :  { %v1117_v58 = vpop.f32.mrb[16].mxu1 }
 0x8c4   :  { %v1119_v59 = vpop.f32.mrb[17].mxu1 }
 0x8c5   :  { %v1164_v60 = vmul.f32 %v1119_v59, %v1117_v58  ;;  %v1121_v61 = vpop.f32.mrb[18].mxu1  ;;  %v2418_v58 = vld [vmem:[%s3173_s7 + $0xd0] sm:$0xff]  }
 0x8c6   :  { %v1122_v62 = vpop.f32.mrb[19].mxu1  ;;  %v2419_v59 = vld [vmem:[%s3173_s7 + $0x90] sm:$0xff]   ;;  %v2421_v61 = vld [vmem:[%s3173_s7 + $0x98] sm:$0xff]  }
 0x8c7   :  { %v1165_v63 = vpack.c.bf16 %v1164_v60, %v1164_v60  ;;  %v2420_v60 = vld [vmem:[%s3173_s7 + $0xd8] sm:$0xff]   ;;  %v2422_v62 = vld [vmem:[%s3173_s7 + $0xe0] sm:$0xff]  }
 0x8c9   :  { %2239 = vmatmul.mubr.bf16.vlgmr.msra.gmra.mrb[16].mxu0 %v1165_v63  ;;  %v2423_v63 = vld [vmem:[%s3173_s7 + $0xa0] sm:$0xff]  }
 0x8ca   :  { %1470 = vmatprep.mubr.bf16.mxu0 %v2545_v0  ;;  %1439 = vmatpush1.bf16.msra.mxu0 %v2390_v31 }
 0x8cb   :  { %1440 = vmatprep.subr.bf16.mxu0 %v2398_v38 }
 0x8ce   :  { %1441 = vmatpush1.bf16.msra.mxu0 %v2396_v33 }
 0x8cf   :  { %1442 = vmatprep.subr.bf16.mxu0 %v2404_v35  ;;  %v2430_v35 = vld [vmem:[#allocation6] sm:$0xff]  }
 0x8d2   :  { %1443 = vmatpush1.bf16.msra.mxu0 %v2402_v17  ;;  %v2432_v17 = vld [vmem:[#allocation6 + $0x10] sm:$0xff]  }
 0x8d3   :  { %v1158_v2 = vpop.f32.mrb[20].mxu1  ;;  %1444 = vmatprep.subr.bf16.mxu0 %v2410_v42 }
 0x8d4   :  { %v2220_v3 = vpop.f32.mrb[21].mxu1 }
 0x8d5   :  { %v1161_v4 = vpop.f32.mrb[22].mxu1  ;;  %v2425_v3 = vld [vmem:[%s3173_s7 + $0xa8] sm:$0xff]  }
 0x8d6   :  { %v2221_v5 = vpop.f32.mrb[23].mxu1  ;;  %1445 = vmatpush1.bf16.msra.mxu0 %v2408_v41  ;;  %v2426_v4 = vld [vmem:[%s3173_s7 + $0xf0] sm:$0xff]  }
 0x8d7   :  { %2111 = vmatprep.subr.bf16.mxu0 %v2414_v54  ;;  %v2427_v5 = vld [vmem:[%s3173_s7 + $0xb0] sm:$0xff]  }
 0x99c   :  { %v1200_v14 = vpop.f32.mrb[16].mxu0 }
 0x99d   :  { %v1918_v16 = vmul.f32 -1.442695, %v1200_v14  ;;  %v2240_v18 = vpop.f32.mrb[17].mxu0 }
 0x99e   :  { %v1203_v19 = vpop.f32.mrb[18].mxu0 }
 0x99f   :  { %2452 = vpow2.f32 %v1918_v16  ;;  %v2241_v20 = vpop.f32.mrb[19].mxu0 }
 0x9a9   :  { %v2453_v21 = vpop.eup %2452 }
 0x9aa   :  { %v1209_v22 = vadd.f32 1.0, %v2453_v21 }
 0x9ac   :  { %2454 = vrcp.f32 %v1209_v22 }
 0x9b6   :  { %v2455_v23 = vpop.eup %2454 }
 0x9b7   :  { %v1212_v24 = vmul.f32 %v2455_v23, %v1158_v2  ;;  %v2424_v2 = vld [vmem:[%s3173_s7 + $0xe8] sm:$0xff]  }
 0x9b9   :  { %v1213_v15 = vpack.c.bf16 %v1212_v24, %v1212_v24 }
 0x9bb   :  { %2259 = vmatmul.mubr.bf16.vlgmr.msra.gmra.mrb[24].mxu1 %v1213_v15 }
 0x9bc   :  { %1511 = vmatprep.mubr.bf16.mxu1 %v2545_v0  ;;  %v2395_v0 = vld [vmem:[%s3172_s6 + $0x8c] ss:$16 sps:$4 sm:$0xff]  }
 0x9bd   :  { %1479 = vmatprep.subr.bf16.mxu1 %v2395_v0 }
 0x9be   :  { %1480 = vmatpush1.bf16.msra.mxu1 %v2393_v32 }
 0xa8e   :  { %v1313_v25 = vpop.f32.mrb[24].mxu1 }
 0xa8f   :  { %v3047_v26 = vadd.f32 %v1313_v25, %v2960_v39  ;;  %v2260_v27 = vpop.f32.mrb[25].mxu1  ;;  %v2401_v39 = vld [vmem:[%s3172_s6 + $0xac] ss:$16 sps:$4 sm:$0xff]  }
 0xa90   :  { %v1316_v28 = vpop.f32.mrb[26].mxu1  ;;  %1481 = vmatprep.subr.bf16.mxu1 %v2401_v39 }
 0xa91   :  { %v2261_v36 = vpop.f32.mrb[27].mxu1  ;;  %v1322_v37 = vmul.f32 %v3047_v26, %v3047_v26  ;;  %1482 = vmatpush1.bf16.msra.mxu1 %v2399_v34 }
 0xa92   :  { %1483 = vmatprep.subr.bf16.mxu1 %v2407_v48  ;;  %v2431_v48 = vld [vmem:[#allocation6 + $0x8] sm:$0xff]  }
 0xa93   :  { %v1323_v29 = vsel %vm196_vm3, %v1322_v37, 0.0 }
 0xa94   :  { %1324 = vadd.xlane.f32.xlu1 %v1323_v29 }
 0xa95   :  { %1484 = vmatpush1.bf16.msra.mxu1 %v2405_v40  ;;  %v2433_v40 = vld [vmem:[#allocation6 + $0x18] sm:$0xff]  }
 0xa96   :  { %1485 = vmatprep.subr.bf16.mxu1 %v2413_v44  ;;  %v2028_v44 = vld [vmem:[%s3175_s9] ss:$0 sm:$0xff] }
 0xa99   :  { %1486 = vmatpush1.bf16.msra.mxu1 %v2411_v43 }
 0xa9a   :  { %2262 = vmatprep.subr.bf16.mxu1 %v2546_v1 }
 0xb21   :  { %v1325_v45 = vpop.xlane.xlu1 %1324 }
 0xb22   :  { %v1326_v46 = vmul.f32 0.015625, %v1325_v45 }
 0xb24   :  { %v1327_v47 = vadd.f32 1e-06, %v1326_v46 }
 0xb26   :  { %2456 = vrsqrt.f32 %v1327_v47 }
 0xb30   :  { %v2457_v49 = vpop.eup %2456 }
 0xb31   :  { %v1329_v51 = vmul.f32 %v2457_v49, %v3047_v26 }
 0xb33   :  { %v1336_v52 = vmul.f32 %v1943_v50, %v1329_v51 }
 0xb35   :  { %v1337_v53 = vpack.c.bf16 %v1336_v52, %v1336_v52 }
 0xb37   :  { %1976 = vmatmul.mubr.msk.bf16.vlgmr.msra.gmra.mrb[20].mxu0 %vm196_vm3, %v1337_v53  ;;  %1977 = vmatmul.mubr.msk.bf16.vlgmr.msra.gmra.mrb[28].mxu1 %vm196_vm3, %v1337_v53 }
 0xb38   :  { %2270 = vmatprep.mubr.msk.bf16.mxu1 %vm2547_vm0, %v2546_v1  ;;  %2112 = vmatpush3.bf16.msra.mxu0 %v2415_v55 }
 0xb39   :  { %2113 = vmatprep.subr.bf16.mxu0 %v2416_v56  ;;  %2263 = vmatpush3.bf16.msra.mxu1 %v2430_v35 }
 0xb3a   :  { %2264 = vmatprep.subr.bf16.mxu1 %v2546_v1 }
 0xb3c   :  { %2114 = vmatpush3.bf16.msra.mxu0 %v2417_v57 }
 0xb3d   :  { %2115 = vmatprep.subr.bf16.mxu0 %v2418_v58  ;;  %2265 = vmatpush3.bf16.msra.mxu1 %v2431_v48 }
 0xb3e   :  { %2266 = vmatprep.subr.bf16.mxu1 %v2546_v1 }
 0xb40   :  { %2116 = vmatpush3.bf16.msra.mxu0 %v2419_v59 }
 0xb41   :  { %2117 = vmatprep.subr.bf16.mxu0 %v2420_v60  ;;  %2267 = vmatpush3.bf16.msra.mxu1 %v2432_v17 }
 0xb42   :  { %2268 = vmatprep.subr.bf16.mxu1 %v2546_v1 }
 0xb44   :  { %2118 = vmatpush3.bf16.msra.mxu0 %v2421_v61 }
 0xb45   :  { %2119 = vmatprep.subr.bf16.mxu0 %v2422_v62  ;;  %2269 = vmatpush3.bf16.msra.mxu1 %v2433_v40 }
 0xb48   :  { %2120 = vmatpush3.bf16.msra.mxu0 %v2423_v63 }
 0xb49   :  { %2121 = vmatprep.subr.bf16.mxu0 %v2424_v2 }
 0xb4c   :  { %2122 = vmatpush3.bf16.msra.mxu0 %v2425_v3 }
 0xb4d   :  { %2123 = vmatprep.subr.bf16.mxu0 %v2426_v4 }
 0xb50   :  { %2124 = vmatpush3.bf16.msra.mxu0 %v2427_v5 }
 0xb51   :  { %2125 = vmatprep.subr.bf16.mxu0 %v2428_v6 }
 0xb54   :  { %2126 = vmatpush3.bf16.msra.mxu0 %v2429_v7 }
 0xc0a   :  { %v1472_v8 = vpop.f32.mrb[20].mxu0  ;;  %v1513_v9 = vpop.f32.mrb[28].mxu1 }
 0xc0b   :  { %v1978_v10 = vmul.f32 -1.442695, %v1472_v8  ;;  %v1474_v11 = vpop.f32.mrb[21].mxu0  ;;  %v1515_v12 = vpop.f32.mrb[29].mxu1 }
 0xc0c   :  { %v1979_v13 = vmul.f32 -1.442695, %v1474_v11  ;;  %v1476_v14 = vpop.f32.mrb[22].mxu0  ;;  %v1517_v16 = vpop.f32.mrb[30].mxu1 }
 0xc0d   :  { %2458 = vpow2.f32 %v1978_v10  ;;  %v1477_v18 = vpop.f32.mrb[23].mxu0  ;;  %v1518_v19 = vpop.f32.mrb[31].mxu1 }
 0xc0e   :  { %2460 = vpow2.f32 %v1979_v13 }
 0xc17   :  { %v2459_v20 = vpop.eup %2458 }
 0xc18   :  { %v2461_v21 = vpop.eup %2460  ;;  %v1526_v22 = vadd.f32 1.0, %v2459_v20 }
 0xc19   :  { %v1527_v23 = vadd.f32 1.0, %v2461_v21 }
 0xc1a   :  { %2462 = vrcp.f32 %v1526_v22 }
 0xc1b   :  { %2464 = vrcp.f32 %v1527_v23 }
 0xc24   :  { %v2463_v24 = vpop.eup %2462 }
 0xc25   :  { %v2465_v15 = vpop.eup %2464  ;;  %v1532_v25 = vmul.f32 %v2463_v24, %v1472_v8 }
 0xc26   :  { %v1533_v27 = vmul.f32 %v2465_v15, %v1474_v11 }
 0xc27   :  { %v1534_v28 = vmul.f32 %v1532_v25, %v1513_v9 }
 0xc28   :  { %v1535_v36 = vmul.f32 %v1533_v27, %v1515_v12 }
 0xc29   :  { %v1536_v29 = vpack.c.bf16 %v1534_v28, %v1534_v28 }
 0xc2a   :  { %v1537_v37 = vpack.c.bf16 %v1535_v36, %v1535_v36 }
 0xc2c   :  { %1699 = vmatprep.mubr.bf16.mxu0 %v1537_v37 }
 0xc2d   :  { %1700 = vmatmul.mubr.bf16.vlgmr.msra.gmra.mrb[24].mxu0 %v1536_v29 }
 0xd00   :  { %v2127_v30 = vpop.f32.mrb[24].mxu0 }
 0xd01   :  { %v2128_v0 = vpop.f32.mrb[25].mxu0 }
 0xd02   :  { %v2129_v31 = vadd.f32 %v2128_v0, %v2127_v30  ;;  %v2130_v32 = vpop.f32.mrb[26].mxu0 }
 0xd03   :  { %v2131_v38 = vpop.f32.mrb[27].mxu0 }
 0xd04   :  { %v1707_v39 = vadd.f32 %v2129_v31, %v3047_v26 }
 0xd06   :  { %v1709_v33 = vmul.f32 %v1707_v39, %v1707_v39 }
 0xd08   :  { %v1710_v34 = vsel %vm196_vm3, %v1709_v33, 0.0 }
 0xd09   :  { %1711 = vadd.xlane.f32.xlu1 %v1710_v34 }
 0xd96   :  { %v1712_v41 = vpop.xlane.xlu1 %1711 }
 0xd97   :  { %v1713_v26 = vmul.f32 0.015625, %v1712_v41 }
 0xd99   :  { %v1714_v42 = vadd.f32 1e-06, %v1713_v26 }
 0xd9b   :  { %2466 = vrsqrt.f32 %v1714_v42 }
 0xda5   :  { %v2467_v43 = vpop.eup %2466 }
 0xda6   :  { %v1716_v45 = vmul.f32 %v2467_v43, %v1707_v39 }
 0xda8   :  { %v1723_v46 = vmul.f32 %v2028_v44, %v1716_v45 }
 0xdaa   :  { %v1724_v47 = vpack.c.bf16 %v1723_v46, %v1723_v46 }
 0xdac   :  { %2271 = vmatmul.mubr.msk.bf16.vlgmr.msra.gmra.mrb[32].mxu1 %vm196_vm3, %v1724_v47 }
 0xe7f   :  { %v1794_v49 = vpop.f32.mrb[32].mxu1 }
 0xe80   :  { %1800 = vst [vmem:[%s3177_s11] sm:$0xff] %v1794_v49  ;;  %v2272_v1 = vpop.f32.mrb[33].mxu1 }
 0xe81   :  { %v1797_v50 = vpop.f32.mrb[34].mxu1 }
 0xe82   :  { %v2273_v51 = vpop.f32.mrb[35].mxu1 }
 0xe83   :  { %1805 = vsyncpa [#allocation3], 1 }
 0xe84   :  { %1806 = vsyncpa [#allocation5], 1 }

</bundles_post_ra>
